<compile_context>
chip_gen: v7x
topology: tpu7x:2x2x1
jax: 0.10.0
libtpu: 0.0.40
codegen_flags: <defaults>
</compile_context>

<pallas_src>
import functools

import jax
import jax.numpy as jnp
from jax.experimental import pallas as pl
from jax.experimental.pallas import tpu as pltpu

NDF = 64                 # layer-1 channels
NDF2 = 2 * NDF           # layer-2 channels
EMBED_DIM = 30
LRELU_SLOPE = 0.2
BN_EPS = 1e-5


# --------------------------- shared helpers (in-kernel & wrapper) ------------ #
def _fold_bn(s, q, count, gamma, beta):
    """Fold (sum, sum-of-squares, count) + affine params into scale/shift.
    Biased variance == PyTorch training-mode BatchNorm."""
    mean = s * (1.0 / count)
    var = jnp.maximum(q * (1.0 / count) - mean * mean, 0.0)
    scale = gamma * jax.lax.rsqrt(var + BN_EPS)
    return scale, beta - mean * scale


def _leaky(v):
    return jnp.where(v >= 0.0, v, LRELU_SLOPE * v)


def _conv2_stride2(y1s, w2_ref, ps_ref, x2_ref, nt):
    """Stride-2 4x4 conv (64 -> 128 ch) over the 8x8 layer-1 map.

    y1s:    (64*nt, 64) f32 value, rows (phase, a, b, n) = layer-1 activation
            at output position (2a + h%2, 2b + w%2), post BN+LReLU.
    ps_ref: (256*nt, 64) bf16 scratch: 4 zero-bordered phase planes of 8x8
            positions (row stride 8*nt, plane stride 64*nt).
    x2_ref: (16*nt, 1024) bf16 scratch: stride-2 im2col, rows (ho, wo, n),
            cols (kh, kw, cin).
    Returns y2 (16*nt, 128) f32.
    """
    # Zero only the padding border conv2 actually reads (plane rows 0 & 5,
    # cols 0 & 5); the 4x4 interior is fully overwritten by the scatter below.
    zrow = jnp.zeros((8 * nt, NDF), jnp.bfloat16)
    zcol = jnp.zeros((nt, NDF), jnp.bfloat16)
    for k in range(4):
        base = k * 64 * nt
        ps_ref[base:base + 8 * nt, :] = zrow                                # row 0
        ps_ref[base + 40 * nt:base + 48 * nt, :] = zrow                     # row 5
        for r in range(1, 5):
            ps_ref[base + r * 8 * nt:base + (r * 8 + 1) * nt, :] = zcol         # col 0
            ps_ref[base + (r * 8 + 5) * nt:base + (r * 8 + 6) * nt, :] = zcol   # col 5

    # Scatter the BN+LReLU'd layer-1 activations (value slices -> bf16 planes).
    for k in range(4):                               # k = (h%2)*2 + (w%2)
        for a in range(4):
            src = (k * 16 + a * 4) * nt
            dst = (k * 64 + (a + 1) * 8 + 1) * nt
            ps_ref[dst:dst + 4 * nt, :] = y1s[src:src + 4 * nt, :].astype(jnp.bfloat16)

    # Gather the stride-2 im2col: every 4x4 tap is one contiguous block copy
    # out of a single plane (zeros in the border == conv padding).
    for i in range(4):
        ph, dh = (i + 1) % 2, (i - 1) // 2
        for j in range(4):
            pw, dw = (j + 1) % 2, (j - 1) // 2
            k_src = ph * 2 + pw
            col0 = (i * 4 + j) * NDF
            for ho in range(4):
                src = (k_src * 64 + (ho + dh + 1) * 8 + (dw + 1)) * nt
                x2_ref[ho * 4 * nt:(ho + 1) * 4 * nt, col0:col0 + NDF] = \
                    ps_ref[src:src + 4 * nt, :]

    return jnp.dot(x2_ref[...], w2_ref[...], preferred_element_type=jnp.float32)


def _head(x_int, w3x, w3e, emb, nt):
    """4x4 'valid' conv over the 4x4 map (+ broadcast-embed term) + sigmoid.

    x_int: (16*nt, 128) f32, rows (ho, wo, n).  w3x: (16, 128).  w3e: (1, 30).
    emb: (nt, 30).  Returns (nt, 1) probabilities.
    """
    w3rep = jnp.broadcast_to(w3x[:, None, :], (16, nt, NDF2)).reshape(16 * nt, NDF2)
    acc = jnp.sum(x_int * w3rep, axis=1, keepdims=True)        # one lane reduction
    acc = acc[:8 * nt] + acc[8 * nt:]                          # tree-add over groups
    acc = acc[:4 * nt] + acc[4 * nt:]
    acc = acc[:2 * nt] + acc[2 * nt:]
    acc = acc[:nt] + acc[nt:]                                  # (nt, 1)
    acc = acc + jnp.sum(emb * w3e, axis=1, keepdims=True)      # embed term
    p = pl.reciprocal(1.0 + jnp.exp(-acc), approx=True)        # sigmoid on the EUP
    return jnp.clip(p, 0.0, 1.0)


# ------------------------------ fused kernel (T == 1) ------------------------ #
def _disc_fused_kernel(n, x1_ref, w1_ref, g1_ref, b1_ref, w2_ref, g2_ref, b2_ref,
                       w3x_ref, w3e_ref, emb_ref, xint_ref, prob_ref, ps_ref, x2_ref):
    # Layer 1: all four output phases in one (64n,16)@(16,64) matmul.
    y1 = jnp.dot(x1_ref[...], w1_ref[...], preferred_element_type=jnp.float32)
    a1, c1 = _fold_bn(jnp.sum(y1, axis=0, keepdims=True),
                      jnp.sum(y1 * y1, axis=0, keepdims=True),
                      float(64 * n), g1_ref[...], b1_ref[...])
    y1 = _leaky(y1 * a1 + c1)

    # Layer 2.
    y2 = _conv2_stride2(y1, w2_ref, ps_ref, x2_ref, n)
    a2, c2 = _fold_bn(jnp.sum(y2, axis=0, keepdims=True),
                      jnp.sum(y2 * y2, axis=0, keepdims=True),
                      float(16 * n), g2_ref[...], b2_ref[...])
    x_int = _leaky(y2 * a2 + c2)
    xint_ref[...] = x_int                                      # lane-dense (16n,128)

    # Layer 3 + sigmoid.
    prob_ref[...] = _head(x_int, w3x_ref[...], w3e_ref[...], emb_ref[...], n)


# --------------------------- batch-tiled pipeline kernels -------------------- #
def _conv1_kernel(x1_ref, w1_ref, y1_ref, st1_ref):
    y1 = jnp.dot(x1_ref[...], w1_ref[...], preferred_element_type=jnp.float32)
    y1_ref[...] = y1.astype(y1_ref.dtype)
    st1_ref[0:1, :] = jnp.sum(y1, axis=0, keepdims=True)       # per-tile partial stats
    st1_ref[1:2, :] = jnp.sum(y1 * y1, axis=0, keepdims=True)


def _conv2_kernel(nt, y1_ref, a1_ref, c1_ref, w2_ref, y2_ref, st2_ref, ps_ref, x2_ref):
    y1 = _leaky(y1_ref[...].astype(jnp.float32) * a1_ref[...] + c1_ref[...])
    y2 = _conv2_stride2(y1, w2_ref, ps_ref, x2_ref, nt)
    y2_ref[...] = y2.astype(y2_ref.dtype)
    st2_ref[0:1, :] = jnp.sum(y2, axis=0, keepdims=True)
    st2_ref[1:2, :] = jnp.sum(y2 * y2, axis=0, keepdims=True)


def _head_kernel(nt, y2_ref, a2_ref, c2_ref, w3x_ref, w3e_ref, emb_ref,
                 xint_ref, prob_ref):
    x_int = _leaky(y2_ref[...].astype(jnp.float32) * a2_ref[...] + c2_ref[...])
    xint_ref[...] = x_int
    prob_ref[...] = _head(x_int, w3x_ref[...], w3e_ref[...], emb_ref[...], nt)


# --------------------------------- JAX wrapper -------------------------------- #
def _phase_im2col(x_nhw, nt):
    """(N,16,16) -> (T, 64*nt, 16) conv1 im2col; per-tile rows (phase, a, b, n)."""
    n = x_nhw.shape[0]
    t = n // nt
    xp = jnp.pad(x_nhw, ((0, 0), (1, 1), (1, 1)))
    phases = []
    for ph in range(2):
        for pw in range(2):
            taps = [xp[:, 2 * ph + i:2 * ph + i + 13:4, 2 * pw + j:2 * pw + j + 13:4]
                    for i in range(4) for j in range(4)]
            phases.append(jnp.stack(taps, axis=-1).reshape(t, nt, 4, 4, 16))
    x1 = jnp.stack(phases, axis=1)                    # (T, phase, n, a, b, taps)
    x1 = jnp.transpose(x1, (0, 1, 3, 4, 2, 5))        # (T, phase, a, b, n, taps)
    return x1.reshape(t, 64 * nt, 16)


def init_params(key):
    k1, k2, k3 = jax.random.split(key, 3)
    return dict(
        # PyTorch Conv2d weight layout (Cout, Cin, kh, kw), bias=False everywhere.
        w1=0.02 * jax.random.normal(k1, (NDF, 1, 4, 4), jnp.float32),
        w2=0.02 * jax.random.normal(k2, (NDF2, NDF, 4, 4), jnp.float32),
        w3=0.02 * jax.random.normal(k3, (1, NDF2 + EMBED_DIM, 4, 4), jnp.float32),
        # BatchNorm2d default init: weight=1, bias=0.
        g1=jnp.ones((1, NDF), jnp.float32), b1=jnp.zeros((1, NDF), jnp.float32),
        g2=jnp.ones((1, NDF2), jnp.float32), b2=jnp.zeros((1, NDF2), jnp.float32),
    )


def _default_tile():
    try:
        kind = jax.devices()[0].device_kind.lower()
        if "v5 lite" in kind or "v5e" in kind or "v5lite" in kind:
            return 8        # v5e MXU is 128 rows: M = 16*8 = 128 is already full height
    except Exception:
        pass
    return 16               # v6e / v7x: M = 16*16 = 256 fills the 256-wide MXU


def _pick_tile(n, target):
    if n <= target:
        return n
    for cand in (target, 16, 8):
        if n % cand == 0:
            return cand
    # TODO(synk): pad + mask the batch for sizes not divisible by 8 instead of
    # falling back to a single fully-resident tile.
    return n


def discriminator_forward(params, inp_nchw, embed, *, batch_tile=None):
    """inp: (N,1,16,16) NCHW, embed: (N,30) -> ((N,), (N,128,4,4) NCHW)."""
    n = inp_nchw.shape[0]
    nt = _pick_tile(n, batch_tile if batch_tile is not None else _default_tile())
    t = n // nt

    x = inp_nchw[:, 0, :, :].astype(jnp.float32)                      # (N,16,16)
    x1 = _phase_im2col(x, nt).astype(jnp.bfloat16)                    # (T,64nt,16)
    w1 = jnp.transpose(params["w1"], (2, 3, 1, 0)).reshape(16, NDF).astype(jnp.bfloat16)
    w2 = jnp.transpose(params["w2"], (2, 3, 1, 0)).reshape(16 * NDF, NDF2
                                                           ).astype(jnp.bfloat16)
    w3 = params["w3"][0].astype(jnp.float32)                          # (158,4,4)
    w3x = jnp.transpose(w3[:NDF2], (1, 2, 0)).reshape(16, NDF2)       # (16,128)
    w3e = jnp.sum(w3[NDF2:], axis=(1, 2)).reshape(1, EMBED_DIM)       # embed weights, 4x4-summed
    emb = embed.astype(jnp.float32)

    vmem = pl.BlockSpec(memory_space=pltpu.MemorySpace.VMEM)

    if t == 1:
        # Small / single-tile batch: one fully fused call, zero HBM round trips,
        # global BN statistics computed in-kernel.
        xint_mat, prob = pl.pallas_call(
            functools.partial(_disc_fused_kernel, n),
            out_shape=(jax.ShapeDtypeStruct((16 * n, NDF2), jnp.float32),
                       jax.ShapeDtypeStruct((n, 1), jnp.float32)),
            in_specs=[vmem] * 10,
            out_specs=(vmem, vmem),
            scratch_shapes=[pltpu.VMEM((256 * n, NDF), jnp.bfloat16),       # phase planes
                            pltpu.VMEM((16 * n, 16 * NDF), jnp.bfloat16)],  # im2col
        )(x1.reshape(64 * n, 16), w1, params["g1"], params["b1"],
          w2, params["g2"], params["b2"], w3x, w3e, emb)
        out = prob.reshape(-1)
        x_intermediate = jnp.transpose(xint_mat.reshape(4, 4, n, NDF2), (2, 3, 0, 1))
        return out, x_intermediate

    # ---- batch-tiled 3-stage pipeline (global BN stats span the whole batch) ----
    parallel = pltpu.CompilerParams(dimension_semantics=("parallel",))

    # Stage 1: conv1 per tile + per-tile partial BN1 stats.
    y1_t, st1 = pl.pallas_call(
        _conv1_kernel,
        grid=(t,),
        out_shape=(jax.ShapeDtypeStruct((t, 64 * nt, NDF), jnp.bfloat16),
                   jax.ShapeDtypeStruct((t, 2, NDF), jnp.float32)),
        in_specs=[pl.BlockSpec((None, 64 * nt, 16), lambda i: (i, 0, 0)),
                  pl.BlockSpec((16, NDF), lambda i: (0, 0))],
        out_specs=(pl.BlockSpec((None, 64 * nt, NDF), lambda i: (i, 0, 0)),
                   pl.BlockSpec((None, 2, NDF), lambda i: (i, 0, 0))),
        compiler_params=parallel,
    )(x1, w1)

    a1, c1 = _fold_bn(jnp.sum(st1[:, 0, :], axis=0, keepdims=True),
                      jnp.sum(st1[:, 1, :], axis=0, keepdims=True),
                      float(64 * n), params["g1"], params["b1"])

    # Stage 2: BN1+LReLU, stride-2 im2col, conv2 matmul, partial BN2 stats.
    y2_t, st2 = pl.pallas_call(
        functools.partial(_conv2_kernel, nt),
        grid=(t,),
        out_shape=(jax.ShapeDtypeStruct((t, 16 * nt, NDF2), jnp.bfloat16),
                   jax.ShapeDtypeStruct((t, 2, NDF2), jnp.float32)),
        in_specs=[pl.BlockSpec((None, 64 * nt, NDF), lambda i: (i, 0, 0)),
                  pl.BlockSpec((1, NDF), lambda i: (0, 0)),
                  pl.BlockSpec((1, NDF), lambda i: (0, 0)),
                  pl.BlockSpec((16 * NDF, NDF2), lambda i: (0, 0))],
        out_specs=(pl.BlockSpec((None, 16 * nt, NDF2), lambda i: (i, 0, 0)),
                   pl.BlockSpec((None, 2, NDF2), lambda i: (i, 0, 0))),
        scratch_shapes=[pltpu.VMEM((256 * nt, NDF), jnp.bfloat16),
                        pltpu.VMEM((16 * nt, 16 * NDF), jnp.bfloat16)],
        compiler_params=parallel,
    )(y1_t, a1, c1, w2)

    a2, c2 = _fold_bn(jnp.sum(st2[:, 0, :], axis=0, keepdims=True),
                      jnp.sum(st2[:, 1, :], axis=0, keepdims=True),
                      float(16 * n), params["g2"], params["b2"])

    # Stage 3: BN2+LReLU -> x_intermediate, conv3 + sigmoid -> prob.
    xint_t, prob_t = pl.pallas_call(
        functools.partial(_head_kernel, nt),
        grid=(t,),
        out_shape=(jax.ShapeDtypeStruct((t, 16 * nt, NDF2), jnp.float32),
                   jax.ShapeDtypeStruct((t, nt, 1), jnp.float32)),
        in_specs=[pl.BlockSpec((None, 16 * nt, NDF2), lambda i: (i, 0, 0)),
                  pl.BlockSpec((1, NDF2), lambda i: (0, 0)),
                  pl.BlockSpec((1, NDF2), lambda i: (0, 0)),
                  pl.BlockSpec((16, NDF2), lambda i: (0, 0)),
                  pl.BlockSpec((1, EMBED_DIM), lambda i: (0, 0)),
                  pl.BlockSpec((None, nt, EMBED_DIM), lambda i: (i, 0, 0))],
        out_specs=(pl.BlockSpec((None, 16 * nt, NDF2), lambda i: (i, 0, 0)),
                   pl.BlockSpec((None, nt, 1), lambda i: (i, 0, 0))),
        compiler_params=parallel,
    )(y2_t, a2, c2, w3x, w3e, emb.reshape(t, nt, EMBED_DIM))

    out = prob_t.reshape(-1)
    x_intermediate = jnp.transpose(xint_t.reshape(t, 4, 4, nt, NDF2),
                                   (0, 3, 4, 1, 2)).reshape(n, NDF2, 4, 4)
    return out, x_intermediate


# ------------------------------ pure-JAX reference ---------------------------- #
def _reference_forward(params, inp, embed):
    def conv(x, w, stride, pad):
        return jax.lax.conv_general_dilated(
            x, w, (stride, stride), [(pad, pad), (pad, pad)],
            dimension_numbers=("NCHW", "OIHW", "NCHW"))

    def bn(x, g, b):
        mean = jnp.mean(x, axis=(0, 2, 3), keepdims=True)
        var = jnp.mean((x - mean) ** 2, axis=(0, 2, 3), keepdims=True)
        return ((x - mean) * jax.lax.rsqrt(var + BN_EPS)
                * g.reshape(1, -1, 1, 1) + b.reshape(1, -1, 1, 1))

    lrelu = lambda v: jnp.where(v >= 0, v, LRELU_SLOPE * v)
    x = inp.astype(jnp.float32)
    h = lrelu(bn(conv(x, params["w1"], 2, 1), params["g1"], params["b1"]))
    x_int = lrelu(bn(conv(h, params["w2"], 2, 1), params["g2"], params["b2"]))
    rep = jnp.broadcast_to(embed.astype(jnp.float32)[:, :, None, None],
                           (embed.shape[0], EMBED_DIM, 4, 4))
    cat = jnp.concatenate([x_int, rep], axis=1)
    y = conv(cat, params["w3"], 1, 0)
    return jax.nn.sigmoid(y).reshape(-1), x_int


if __name__ == "__main__":
    key = jax.random.PRNGKey(0)
    kp, ki, ke, ki2, ke2 = jax.random.split(key, 5)
    params = init_params(kp)
    fwd = jax.jit(functools.partial(discriminator_forward, params))

    # Small batch -> single fused kernel (whole problem VMEM-resident).
    inp = jax.random.normal(ki, (2, 1, 16, 16), jnp.float32)
    embed = jax.random.normal(ke, (2, EMBED_DIM), jnp.float32)
    out, x_int = fwd(inp, embed)
    jax.block_until_ready((out, x_int))
    assert out.shape == (2,) and x_int.shape == (2, NDF2, 4, 4)
    assert bool(jnp.all(jnp.isfinite(out))) and bool(jnp.all(jnp.isfinite(x_int)))
    assert bool(jnp.all((out >= 0.0) & (out <= 1.0)))
    ref_out, ref_xint = _reference_forward(params, inp, embed)
    assert float(jnp.max(jnp.abs(x_int - ref_xint))) < 0.25
    assert float(jnp.max(jnp.abs(out - ref_out))) < 0.05

    # Larger batch -> batch-tiled 3-stage pipeline (grid parallel over tiles).
    inp2 = jax.random.normal(ki2, (32, 1, 16, 16), jnp.float32)
    embed2 = jax.random.normal(ke2, (32, EMBED_DIM), jnp.float32)
    out2, x_int2 = fwd(inp2, embed2)
    jax.block_until_ready((out2, x_int2))
    assert out2.shape == (32,) and x_int2.shape == (32, NDF2, 4, 4)
    assert bool(jnp.all((out2 >= 0.0) & (out2 <= 1.0)))
    ref_out2, ref_xint2 = _reference_forward(params, inp2, embed2)
    assert float(jnp.max(jnp.abs(x_int2 - ref_xint2))) < 0.25
    assert float(jnp.max(jnp.abs(out2 - ref_out2))) < 0.05

    print("KERNEL_OK")
</pallas_src>

<mosaic_0001>
module attributes {stable_mosaic.version = 11 : i64} {
  func.func @_disc_fused_kernel(%arg0: memref<128x16xbf16, #tpu.memory_space<vmem>>, %arg1: memref<16x64xbf16, #tpu.memory_space<vmem>>, %arg2: memref<1x64xf32, #tpu.memory_space<vmem>>, %arg3: memref<1x64xf32, #tpu.memory_space<vmem>>, %arg4: memref<1024x128xbf16, #tpu.memory_space<vmem>>, %arg5: memref<1x128xf32, #tpu.memory_space<vmem>>, %arg6: memref<1x128xf32, #tpu.memory_space<vmem>>, %arg7: memref<16x128xf32, #tpu.memory_space<vmem>>, %arg8: memref<1x30xf32, #tpu.memory_space<vmem>>, %arg9: memref<2x30xf32, #tpu.memory_space<vmem>>, %arg10: memref<32x128xf32, #tpu.memory_space<vmem>>, %arg11: memref<2x1xf32, #tpu.memory_space<vmem>>, %arg12: memref<512x64xbf16, #tpu.memory_space<vmem>>, %arg13: memref<32x1024xbf16, #tpu.memory_space<vmem>>) attributes {dimension_semantics = [], scalar_prefetch = 0 : i64, scratch_operands = 2 : i64, tpu.core_type = #tpu.core_type<tc>} {
    %c0 = arith.constant 0 : index
    %c0_0 = arith.constant 0 : index
    %0 = vector.load %arg0[%c0, %c0_0] : memref<128x16xbf16, #tpu.memory_space<vmem>>, vector<128x16xbf16>
    %c0_1 = arith.constant 0 : index
    %c0_2 = arith.constant 0 : index
    %1 = vector.load %arg1[%c0_1, %c0_2] : memref<16x64xbf16, #tpu.memory_space<vmem>>, vector<16x64xbf16>
    %cst = arith.constant dense<0.000000e+00> : vector<128x64xf32>
    %2 = tpu.matmul %0, %1, %cst {dimension_numbers = #tpu.dot_dimension_numbers<[1], [0], [0], [1], [0, 0, 1, 1], [], []>} : vector<128x16xbf16>, vector<16x64xbf16>, vector<128x64xf32> -> vector<128x64xf32>
    %cst_3 = arith.constant dense<0.000000e+00> : vector<64xf32>
    %3 = vector.multi_reduction <add>, %2, %cst_3 [0] : vector<128x64xf32> to vector<64xf32>
    %4 = vector.shape_cast %3 : vector<64xf32> to vector<1x64xf32>
    %5 = arith.mulf %2, %2 : vector<128x64xf32>
    %cst_4 = arith.constant dense<0.000000e+00> : vector<64xf32>
    %6 = vector.multi_reduction <add>, %5, %cst_4 [0] : vector<128x64xf32> to vector<64xf32>
    %7 = vector.shape_cast %6 : vector<64xf32> to vector<1x64xf32>
    %c0_5 = arith.constant 0 : index
    %c0_6 = arith.constant 0 : index
    %8 = vector.load %arg2[%c0_5, %c0_6] : memref<1x64xf32, #tpu.memory_space<vmem>>, vector<1x64xf32>
    %c0_7 = arith.constant 0 : index
    %c0_8 = arith.constant 0 : index
    %9 = vector.load %arg3[%c0_7, %c0_8] : memref<1x64xf32, #tpu.memory_space<vmem>>, vector<1x64xf32>
    %cst_9 = arith.constant 7.812500e-03 : f32
    %10 = vector.broadcast %cst_9 : f32 to vector<1x64xf32>
    %11 = arith.mulf %4, %10 : vector<1x64xf32>
    %cst_10 = arith.constant 7.812500e-03 : f32
    %12 = vector.broadcast %cst_10 : f32 to vector<1x64xf32>
    %13 = arith.mulf %7, %12 : vector<1x64xf32>
    %14 = arith.mulf %11, %11 : vector<1x64xf32>
    %15 = arith.subf %13, %14 : vector<1x64xf32>
    %cst_11 = arith.constant 0.000000e+00 : f32
    %16 = vector.broadcast %cst_11 : f32 to vector<1x64xf32>
    %17 = arith.maximumf %15, %16 : vector<1x64xf32>
    %cst_12 = arith.constant 9.99999974E-6 : f32
    %18 = vector.broadcast %cst_12 : f32 to vector<1x64xf32>
    %19 = arith.addf %17, %18 : vector<1x64xf32>
    %20 = math.rsqrt %19 : vector<1x64xf32>
    %21 = arith.mulf %8, %20 : vector<1x64xf32>
    %22 = arith.mulf %11, %21 : vector<1x64xf32>
    %23 = arith.subf %9, %22 : vector<1x64xf32>
    %24 = vector.broadcast %21 : vector<1x64xf32> to vector<128x64xf32>
    %25 = arith.mulf %2, %24 : vector<128x64xf32>
    %26 = vector.broadcast %23 : vector<1x64xf32> to vector<128x64xf32>
    %27 = arith.addf %25, %26 : vector<128x64xf32>
    %cst_13 = arith.constant 0.000000e+00 : f32
    %28 = vector.broadcast %cst_13 : f32 to vector<128x64xf32>
    %29 = arith.cmpf oge, %27, %28 : vector<128x64xf32>
    %cst_14 = arith.constant 2.000000e-01 : f32
    %30 = vector.broadcast %cst_14 : f32 to vector<128x64xf32>
    %31 = arith.mulf %30, %27 : vector<128x64xf32>
    %32 = arith.select %29, %27, %31 : vector<128x64xi1>, vector<128x64xf32>
    %cst_15 = arith.constant 0.000000e+00 : bf16
    %33 = vector.broadcast %cst_15 : bf16 to vector<16x64xbf16>
    %cst_16 = arith.constant 0.000000e+00 : bf16
    %34 = vector.broadcast %cst_16 : bf16 to vector<2x64xbf16>
    %c0_17 = arith.constant 0 : index
    %c0_18 = arith.constant 0 : index
    %35 = vector.load %arg12[%c0_17, %c0_18] : memref<512x64xbf16, #tpu.memory_space<vmem>>, vector<16x64xbf16>
    tpu.vector_store %arg12[%c0_17, %c0_18], %33 {strides = array<i32>} : memref<512x64xbf16, #tpu.memory_space<vmem>>, vector<16x64xbf16>,
    %c80 = arith.constant 80 : index
    %c0_19 = arith.constant 0 : index
    %36 = vector.load %arg12[%c80, %c0_19] : memref<512x64xbf16, #tpu.memory_space<vmem>>, vector<16x64xbf16>
    tpu.vector_store %arg12[%c80, %c0_19], %33 {strides = array<i32>} : memref<512x64xbf16, #tpu.memory_space<vmem>>, vector<16x64xbf16>,
    %c16 = arith.constant 16 : index
    %c0_20 = arith.constant 0 : index
    %37 = vector.load %arg12[%c16, %c0_20] : memref<512x64xbf16, #tpu.memory_space<vmem>>, vector<2x64xbf16>
    tpu.vector_store %arg12[%c16, %c0_20], %34 {strides = array<i32>} : memref<512x64xbf16, #tpu.memory_space<vmem>>, vector<2x64xbf16>,
    %c26 = arith.constant 26 : index
    %c0_21 = arith.constant 0 : index
    %38 = vector.load %arg12[%c26, %c0_21] : memref<512x64xbf16, #tpu.memory_space<vmem>>, vector<2x64xbf16>
    tpu.vector_store %arg12[%c26, %c0_21], %34 {strides = array<i32>} : memref<512x64xbf16, #tpu.memory_space<vmem>>, vector<2x64xbf16>,
    %c32 = arith.constant 32 : index
    %c0_22 = arith.constant 0 : index
    %39 = vector.load %arg12[%c32, %c0_22] : memref<512x64xbf16, #tpu.memory_space<vmem>>, vector<2x64xbf16>
    tpu.vector_store %arg12[%c32, %c0_22], %34 {strides = array<i32>} : memref<512x64xbf16, #tpu.memory_space<vmem>>, vector<2x64xbf16>,
    %c42 = arith.constant 42 : index
    %c0_23 = arith.constant 0 : index
    %40 = vector.load %arg12[%c42, %c0_23] : memref<512x64xbf16, #tpu.memory_space<vmem>>, vector<2x64xbf16>
    tpu.vector_store %arg12[%c42, %c0_23], %34 {strides = array<i32>} : memref<512x64xbf16, #tpu.memory_space<vmem>>, vector<2x64xbf16>,
    %c48 = arith.constant 48 : index
    %c0_24 = arith.constant 0 : index
    %41 = vector.load %arg12[%c48, %c0_24] : memref<512x64xbf16, #tpu.memory_space<vmem>>, vector<2x64xbf16>
    tpu.vector_store %arg12[%c48, %c0_24], %34 {strides = array<i32>} : memref<512x64xbf16, #tpu.memory_space<vmem>>, vector<2x64xbf16>,
    %c58 = arith.constant 58 : index
    %c0_25 = arith.constant 0 : index
    %42 = vector.load %arg12[%c58, %c0_25] : memref<512x64xbf16, #tpu.memory_space<vmem>>, vector<2x64xbf16>
    tpu.vector_store %arg12[%c58, %c0_25], %34 {strides = array<i32>} : memref<512x64xbf16, #tpu.memory_space<vmem>>, vector<2x64xbf16>,
    %c64 = arith.constant 64 : index
    %c0_26 = arith.constant 0 : index
    %43 = vector.load %arg12[%c64, %c0_26] : memref<512x64xbf16, #tpu.memory_space<vmem>>, vector<2x64xbf16>
    tpu.vector_store %arg12[%c64, %c0_26], %34 {strides = array<i32>} : memref<512x64xbf16, #tpu.memory_space<vmem>>, vector<2x64xbf16>,
    %c74 = arith.constant 74 : index
    %c0_27 = arith.constant 0 : index
    %44 = vector.load %arg12[%c74, %c0_27] : memref<512x64xbf16, #tpu.memory_space<vmem>>, vector<2x64xbf16>
    tpu.vector_store %arg12[%c74, %c0_27], %34 {strides = array<i32>} : memref<512x64xbf16, #tpu.memory_space<vmem>>, vector<2x64xbf16>,
    %c128 = arith.constant 128 : index
    %c0_28 = arith.constant 0 : index
    %45 = vector.load %arg12[%c128, %c0_28] : memref<512x64xbf16, #tpu.memory_space<vmem>>, vector<16x64xbf16>
    tpu.vector_store %arg12[%c128, %c0_28], %33 {strides = array<i32>} : memref<512x64xbf16, #tpu.memory_space<vmem>>, vector<16x64xbf16>,
    %c208 = arith.constant 208 : index
    %c0_29 = arith.constant 0 : index
    %46 = vector.load %arg12[%c208, %c0_29] : memref<512x64xbf16, #tpu.memory_space<vmem>>, vector<16x64xbf16>
    tpu.vector_store %arg12[%c208, %c0_29], %33 {strides = array<i32>} : memref<512x64xbf16, #tpu.memory_space<vmem>>, vector<16x64xbf16>,
    %c144 = arith.constant 144 : index
    %c0_30 = arith.constant 0 : index
    %47 = vector.load %arg12[%c144, %c0_30] : memref<512x64xbf16, #tpu.memory_space<vmem>>, vector<2x64xbf16>
    tpu.vector_store %arg12[%c144, %c0_30], %34 {strides = array<i32>} : memref<512x64xbf16, #tpu.memory_space<vmem>>, vector<2x64xbf16>,
    %c154 = arith.constant 154 : index
    %c0_31 = arith.constant 0 : index
    %48 = vector.load %arg12[%c154, %c0_31] : memref<512x64xbf16, #tpu.memory_space<vmem>>, vector<2x64xbf16>
    tpu.vector_store %arg12[%c154, %c0_31], %34 {strides = array<i32>} : memref<512x64xbf16, #tpu.memory_space<vmem>>, vector<2x64xbf16>,
    %c160 = arith.constant 160 : index
    %c0_32 = arith.constant 0 : index
    %49 = vector.load %arg12[%c160, %c0_32] : memref<512x64xbf16, #tpu.memory_space<vmem>>, vector<2x64xbf16>
    tpu.vector_store %arg12[%c160, %c0_32], %34 {strides = array<i32>} : memref<512x64xbf16, #tpu.memory_space<vmem>>, vector<2x64xbf16>,
    %c170 = arith.constant 170 : index
    %c0_33 = arith.constant 0 : index
    %50 = vector.load %arg12[%c170, %c0_33] : memref<512x64xbf16, #tpu.memory_space<vmem>>, vector<2x64xbf16>
    tpu.vector_store %arg12[%c170, %c0_33], %34 {strides = array<i32>} : memref<512x64xbf16, #tpu.memory_space<vmem>>, vector<2x64xbf16>,
    %c176 = arith.constant 176 : index
    %c0_34 = arith.constant 0 : index
    %51 = vector.load %arg12[%c176, %c0_34] : memref<512x64xbf16, #tpu.memory_space<vmem>>, vector<2x64xbf16>
    tpu.vector_store %arg12[%c176, %c0_34], %34 {strides = array<i32>} : memref<512x64xbf16, #tpu.memory_space<vmem>>, vector<2x64xbf16>,
    %c186 = arith.constant 186 : index
    %c0_35 = arith.constant 0 : index
    %52 = vector.load %arg12[%c186, %c0_35] : memref<512x64xbf16, #tpu.memory_space<vmem>>, vector<2x64xbf16>
    tpu.vector_store %arg12[%c186, %c0_35], %34 {strides = array<i32>} : memref<512x64xbf16, #tpu.memory_space<vmem>>, vector<2x64xbf16>,
    %c192 = arith.constant 192 : index
    %c0_36 = arith.constant 0 : index
    %53 = vector.load %arg12[%c192, %c0_36] : memref<512x64xbf16, #tpu.memory_space<vmem>>, vector<2x64xbf16>
    tpu.vector_store %arg12[%c192, %c0_36], %34 {strides = array<i32>} : memref<512x64xbf16, #tpu.memory_space<vmem>>, vector<2x64xbf16>,
    %c202 = arith.constant 202 : index
    %c0_37 = arith.constant 0 : index
    %54 = vector.load %arg12[%c202, %c0_37] : memref<512x64xbf16, #tpu.memory_space<vmem>>, vector<2x64xbf16>
    tpu.vector_store %arg12[%c202, %c0_37], %34 {strides = array<i32>} : memref<512x64xbf16, #tpu.memory_space<vmem>>, vector<2x64xbf16>,
    %c256 = arith.constant 256 : index
    %c0_38 = arith.constant 0 : index
    %55 = vector.load %arg12[%c256, %c0_38] : memref<512x64xbf16, #tpu.memory_space<vmem>>, vector<16x64xbf16>
    tpu.vector_store %arg12[%c256, %c0_38], %33 {strides = array<i32>} : memref<512x64xbf16, #tpu.memory_space<vmem>>, vector<16x64xbf16>,
    %c336 = arith.constant 336 : index
    %c0_39 = arith.constant 0 : index
    %56 = vector.load %arg12[%c336, %c0_39] : memref<512x64xbf16, #tpu.memory_space<vmem>>, vector<16x64xbf16>
    tpu.vector_store %arg12[%c336, %c0_39], %33 {strides = array<i32>} : memref<512x64xbf16, #tpu.memory_space<vmem>>, vector<16x64xbf16>,
    %c272 = arith.constant 272 : index
    %c0_40 = arith.constant 0 : index
    %57 = vector.load %arg12[%c272, %c0_40] : memref<512x64xbf16, #tpu.memory_space<vmem>>, vector<2x64xbf16>
    tpu.vector_store %arg12[%c272, %c0_40], %34 {strides = array<i32>} : memref<512x64xbf16, #tpu.memory_space<vmem>>, vector<2x64xbf16>,
    %c282 = arith.constant 282 : index
    %c0_41 = arith.constant 0 : index
    %58 = vector.load %arg12[%c282, %c0_41] : memref<512x64xbf16, #tpu.memory_space<vmem>>, vector<2x64xbf16>
    tpu.vector_store %arg12[%c282, %c0_41], %34 {strides = array<i32>} : memref<512x64xbf16, #tpu.memory_space<vmem>>, vector<2x64xbf16>,
    %c288 = arith.constant 288 : index
    %c0_42 = arith.constant 0 : index
    %59 = vector.load %arg12[%c288, %c0_42] : memref<512x64xbf16, #tpu.memory_space<vmem>>, vector<2x64xbf16>
    tpu.vector_store %arg12[%c288, %c0_42], %34 {strides = array<i32>} : memref<512x64xbf16, #tpu.memory_space<vmem>>, vector<2x64xbf16>,
    %c298 = arith.constant 298 : index
    %c0_43 = arith.constant 0 : index
    %60 = vector.load %arg12[%c298, %c0_43] : memref<512x64xbf16, #tpu.memory_space<vmem>>, vector<2x64xbf16>
    tpu.vector_store %arg12[%c298, %c0_43], %34 {strides = array<i32>} : memref<512x64xbf16, #tpu.memory_space<vmem>>, vector<2x64xbf16>,
    %c304 = arith.constant 304 : index
    %c0_44 = arith.constant 0 : index
    %61 = vector.load %arg12[%c304, %c0_44] : memref<512x64xbf16, #tpu.memory_space<vmem>>, vector<2x64xbf16>
    tpu.vector_store %arg12[%c304, %c0_44], %34 {strides = array<i32>} : memref<512x64xbf16, #tpu.memory_space<vmem>>, vector<2x64xbf16>,
    %c314 = arith.constant 314 : index
    %c0_45 = arith.constant 0 : index
    %62 = vector.load %arg12[%c314, %c0_45] : memref<512x64xbf16, #tpu.memory_space<vmem>>, vector<2x64xbf16>
    tpu.vector_store %arg12[%c314, %c0_45], %34 {strides = array<i32>} : memref<512x64xbf16, #tpu.memory_space<vmem>>, vector<2x64xbf16>,
    %c320 = arith.constant 320 : index
    %c0_46 = arith.constant 0 : index
    %63 = vector.load %arg12[%c320, %c0_46] : memref<512x64xbf16, #tpu.memory_space<vmem>>, vector<2x64xbf16>
    tpu.vector_store %arg12[%c320, %c0_46], %34 {strides = array<i32>} : memref<512x64xbf16, #tpu.memory_space<vmem>>, vector<2x64xbf16>,
    %c330 = arith.constant 330 : index
    %c0_47 = arith.constant 0 : index
    %64 = vector.load %arg12[%c330, %c0_47] : memref<512x64xbf16, #tpu.memory_space<vmem>>, vector<2x64xbf16>
    tpu.vector_store %arg12[%c330, %c0_47], %34 {strides = array<i32>} : memref<512x64xbf16, #tpu.memory_space<vmem>>, vector<2x64xbf16>,
    %c384 = arith.constant 384 : index
    %c0_48 = arith.constant 0 : index
    %65 = vector.load %arg12[%c384, %c0_48] : memref<512x64xbf16, #tpu.memory_space<vmem>>, vector<16x64xbf16>
    tpu.vector_store %arg12[%c384, %c0_48], %33 {strides = array<i32>} : memref<512x64xbf16, #tpu.memory_space<vmem>>, vector<16x64xbf16>,
    %c464 = arith.constant 464 : index
    %c0_49 = arith.constant 0 : index
    %66 = vector.load %arg12[%c464, %c0_49] : memref<512x64xbf16, #tpu.memory_space<vmem>>, vector<16x64xbf16>
    tpu.vector_store %arg12[%c464, %c0_49], %33 {strides = array<i32>} : memref<512x64xbf16, #tpu.memory_space<vmem>>, vector<16x64xbf16>,
    %c400 = arith.constant 400 : index
    %c0_50 = arith.constant 0 : index
    %67 = vector.load %arg12[%c400, %c0_50] : memref<512x64xbf16, #tpu.memory_space<vmem>>, vector<2x64xbf16>
    tpu.vector_store %arg12[%c400, %c0_50], %34 {strides = array<i32>} : memref<512x64xbf16, #tpu.memory_space<vmem>>, vector<2x64xbf16>,
    %c410 = arith.constant 410 : index
    %c0_51 = arith.constant 0 : index
    %68 = vector.load %arg12[%c410, %c0_51] : memref<512x64xbf16, #tpu.memory_space<vmem>>, vector<2x64xbf16>
    tpu.vector_store %arg12[%c410, %c0_51], %34 {strides = array<i32>} : memref<512x64xbf16, #tpu.memory_space<vmem>>, vector<2x64xbf16>,
    %c416 = arith.constant 416 : index
    %c0_52 = arith.constant 0 : index
    %69 = vector.load %arg12[%c416, %c0_52] : memref<512x64xbf16, #tpu.memory_space<vmem>>, vector<2x64xbf16>
    tpu.vector_store %arg12[%c416, %c0_52], %34 {strides = array<i32>} : memref<512x64xbf16, #tpu.memory_space<vmem>>, vector<2x64xbf16>,
    %c426 = arith.constant 426 : index
    %c0_53 = arith.constant 0 : index
    %70 = vector.load %arg12[%c426, %c0_53] : memref<512x64xbf16, #tpu.memory_space<vmem>>, vector<2x64xbf16>
    tpu.vector_store %arg12[%c426, %c0_53], %34 {strides = array<i32>} : memref<512x64xbf16, #tpu.memory_space<vmem>>, vector<2x64xbf16>,
    %c432 = arith.constant 432 : index
    %c0_54 = arith.constant 0 : index
    %71 = vector.load %arg12[%c432, %c0_54] : memref<512x64xbf16, #tpu.memory_space<vmem>>, vector<2x64xbf16>
    tpu.vector_store %arg12[%c432, %c0_54], %34 {strides = array<i32>} : memref<512x64xbf16, #tpu.memory_space<vmem>>, vector<2x64xbf16>,
    %c442 = arith.constant 442 : index
    %c0_55 = arith.constant 0 : index
    %72 = vector.load %arg12[%c442, %c0_55] : memref<512x64xbf16, #tpu.memory_space<vmem>>, vector<2x64xbf16>
    tpu.vector_store %arg12[%c442, %c0_55], %34 {strides = array<i32>} : memref<512x64xbf16, #tpu.memory_space<vmem>>, vector<2x64xbf16>,
    %c448 = arith.constant 448 : index
    %c0_56 = arith.constant 0 : index
    %73 = vector.load %arg12[%c448, %c0_56] : memref<512x64xbf16, #tpu.memory_space<vmem>>, vector<2x64xbf16>
    tpu.vector_store %arg12[%c448, %c0_56], %34 {strides = array<i32>} : memref<512x64xbf16, #tpu.memory_space<vmem>>, vector<2x64xbf16>,
    %c458 = arith.constant 458 : index
    %c0_57 = arith.constant 0 : index
    %74 = vector.load %arg12[%c458, %c0_57] : memref<512x64xbf16, #tpu.memory_space<vmem>>, vector<2x64xbf16>
    tpu.vector_store %arg12[%c458, %c0_57], %34 {strides = array<i32>} : memref<512x64xbf16, #tpu.memory_space<vmem>>, vector<2x64xbf16>,
    %75 = vector.extract_strided_slice %32 {offsets = [0, 0], sizes = [8, 64], strides = [1, 1]} : vector<128x64xf32> to vector<8x64xf32>
    %76 = arith.truncf %75 : vector<8x64xf32> to vector<8x64xbf16>
    %c18 = arith.constant 18 : index
    %c0_58 = arith.constant 0 : index
    %77 = vector.load %arg12[%c18, %c0_58] : memref<512x64xbf16, #tpu.memory_space<vmem>>, vector<8x64xbf16>
    tpu.vector_store %arg12[%c18, %c0_58], %76 {strides = array<i32>} : memref<512x64xbf16, #tpu.memory_space<vmem>>, vector<8x64xbf16>,
    %78 = vector.extract_strided_slice %32 {offsets = [8, 0], sizes = [8, 64], strides = [1, 1]} : vector<128x64xf32> to vector<8x64xf32>
    %79 = arith.truncf %78 : vector<8x64xf32> to vector<8x64xbf16>
    %c34 = arith.constant 34 : index
    %c0_59 = arith.constant 0 : index
    %80 = vector.load %arg12[%c34, %c0_59] : memref<512x64xbf16, #tpu.memory_space<vmem>>, vector<8x64xbf16>
    tpu.vector_store %arg12[%c34, %c0_59], %79 {strides = array<i32>} : memref<512x64xbf16, #tpu.memory_space<vmem>>, vector<8x64xbf16>,
    %81 = vector.extract_strided_slice %32 {offsets = [16, 0], sizes = [8, 64], strides = [1, 1]} : vector<128x64xf32> to vector<8x64xf32>
    %82 = arith.truncf %81 : vector<8x64xf32> to vector<8x64xbf16>
    %c50 = arith.constant 50 : index
    %c0_60 = arith.constant 0 : index
    %83 = vector.load %arg12[%c50, %c0_60] : memref<512x64xbf16, #tpu.memory_space<vmem>>, vector<8x64xbf16>
    tpu.vector_store %arg12[%c50, %c0_60], %82 {strides = array<i32>} : memref<512x64xbf16, #tpu.memory_space<vmem>>, vector<8x64xbf16>,
    %84 = vector.extract_strided_slice %32 {offsets = [24, 0], sizes = [8, 64], strides = [1, 1]} : vector<128x64xf32> to vector<8x64xf32>
    %85 = arith.truncf %84 : vector<8x64xf32> to vector<8x64xbf16>
    %c66 = arith.constant 66 : index
    %c0_61 = arith.constant 0 : index
    %86 = vector.load %arg12[%c66, %c0_61] : memref<512x64xbf16, #tpu.memory_space<vmem>>, vector<8x64xbf16>
    tpu.vector_store %arg12[%c66, %c0_61], %85 {strides = array<i32>} : memref<512x64xbf16, #tpu.memory_space<vmem>>, vector<8x64xbf16>,
    %87 = vector.extract_strided_slice %32 {offsets = [32, 0], sizes = [8, 64], strides = [1, 1]} : vector<128x64xf32> to vector<8x64xf32>
    %88 = arith.truncf %87 : vector<8x64xf32> to vector<8x64xbf16>
    %c146 = arith.constant 146 : index
    %c0_62 = arith.constant 0 : index
    %89 = vector.load %arg12[%c146, %c0_62] : memref<512x64xbf16, #tpu.memory_space<vmem>>, vector<8x64xbf16>
    tpu.vector_store %arg12[%c146, %c0_62], %88 {strides = array<i32>} : memref<512x64xbf16, #tpu.memory_space<vmem>>, vector<8x64xbf16>,
    %90 = vector.extract_strided_slice %32 {offsets = [40, 0], sizes = [8, 64], strides = [1, 1]} : vector<128x64xf32> to vector<8x64xf32>
    %91 = arith.truncf %90 : vector<8x64xf32> to vector<8x64xbf16>
    %c162 = arith.constant 162 : index
    %c0_63 = arith.constant 0 : index
    %92 = vector.load %arg12[%c162, %c0_63] : memref<512x64xbf16, #tpu.memory_space<vmem>>, vector<8x64xbf16>
    tpu.vector_store %arg12[%c162, %c0_63], %91 {strides = array<i32>} : memref<512x64xbf16, #tpu.memory_space<vmem>>, vector<8x64xbf16>,
    %93 = vector.extract_strided_slice %32 {offsets = [48, 0], sizes = [8, 64], strides = [1, 1]} : vector<128x64xf32> to vector<8x64xf32>
    %94 = arith.truncf %93 : vector<8x64xf32> to vector<8x64xbf16>
    %c178 = arith.constant 178 : index
    %c0_64 = arith.constant 0 : index
    %95 = vector.load %arg12[%c178, %c0_64] : memref<512x64xbf16, #tpu.memory_space<vmem>>, vector<8x64xbf16>
    tpu.vector_store %arg12[%c178, %c0_64], %94 {strides = array<i32>} : memref<512x64xbf16, #tpu.memory_space<vmem>>, vector<8x64xbf16>,
    %96 = vector.extract_strided_slice %32 {offsets = [56, 0], sizes = [8, 64], strides = [1, 1]} : vector<128x64xf32> to vector<8x64xf32>
    %97 = arith.truncf %96 : vector<8x64xf32> to vector<8x64xbf16>
    %c194 = arith.constant 194 : index
    %c0_65 = arith.constant 0 : index
    %98 = vector.load %arg12[%c194, %c0_65] : memref<512x64xbf16, #tpu.memory_space<vmem>>, vector<8x64xbf16>
    tpu.vector_store %arg12[%c194, %c0_65], %97 {strides = array<i32>} : memref<512x64xbf16, #tpu.memory_space<vmem>>, vector<8x64xbf16>,
    %99 = vector.extract_strided_slice %32 {offsets = [64, 0], sizes = [8, 64], strides = [1, 1]} : vector<128x64xf32> to vector<8x64xf32>
    %100 = arith.truncf %99 : vector<8x64xf32> to vector<8x64xbf16>
    %c274 = arith.constant 274 : index
    %c0_66 = arith.constant 0 : index
    %101 = vector.load %arg12[%c274, %c0_66] : memref<512x64xbf16, #tpu.memory_space<vmem>>, vector<8x64xbf16>
    tpu.vector_store %arg12[%c274, %c0_66], %100 {strides = array<i32>} : memref<512x64xbf16, #tpu.memory_space<vmem>>, vector<8x64xbf16>,
    %102 = vector.extract_strided_slice %32 {offsets = [72, 0], sizes = [8, 64], strides = [1, 1]} : vector<128x64xf32> to vector<8x64xf32>
    %103 = arith.truncf %102 : vector<8x64xf32> to vector<8x64xbf16>
    %c290 = arith.constant 290 : index
    %c0_67 = arith.constant 0 : index
    %104 = vector.load %arg12[%c290, %c0_67] : memref<512x64xbf16, #tpu.memory_space<vmem>>, vector<8x64xbf16>
    tpu.vector_store %arg12[%c290, %c0_67], %103 {strides = array<i32>} : memref<512x64xbf16, #tpu.memory_space<vmem>>, vector<8x64xbf16>,
    %105 = vector.extract_strided_slice %32 {offsets = [80, 0], sizes = [8, 64], strides = [1, 1]} : vector<128x64xf32> to vector<8x64xf32>
    %106 = arith.truncf %105 : vector<8x64xf32> to vector<8x64xbf16>
    %c306 = arith.constant 306 : index
    %c0_68 = arith.constant 0 : index
    %107 = vector.load %arg12[%c306, %c0_68] : memref<512x64xbf16, #tpu.memory_space<vmem>>, vector<8x64xbf16>
    tpu.vector_store %arg12[%c306, %c0_68], %106 {strides = array<i32>} : memref<512x64xbf16, #tpu.memory_space<vmem>>, vector<8x64xbf16>,
    %108 = vector.extract_strided_slice %32 {offsets = [88, 0], sizes = [8, 64], strides = [1, 1]} : vector<128x64xf32> to vector<8x64xf32>
    %109 = arith.truncf %108 : vector<8x64xf32> to vector<8x64xbf16>
    %c322 = arith.constant 322 : index
    %c0_69 = arith.constant 0 : index
    %110 = vector.load %arg12[%c322, %c0_69] : memref<512x64xbf16, #tpu.memory_space<vmem>>, vector<8x64xbf16>
    tpu.vector_store %arg12[%c322, %c0_69], %109 {strides = array<i32>} : memref<512x64xbf16, #tpu.memory_space<vmem>>, vector<8x64xbf16>,
    %111 = vector.extract_strided_slice %32 {offsets = [96, 0], sizes = [8, 64], strides = [1, 1]} : vector<128x64xf32> to vector<8x64xf32>
    %112 = arith.truncf %111 : vector<8x64xf32> to vector<8x64xbf16>
    %c402 = arith.constant 402 : index
    %c0_70 = arith.constant 0 : index
    %113 = vector.load %arg12[%c402, %c0_70] : memref<512x64xbf16, #tpu.memory_space<vmem>>, vector<8x64xbf16>
    tpu.vector_store %arg12[%c402, %c0_70], %112 {strides = array<i32>} : memref<512x64xbf16, #tpu.memory_space<vmem>>, vector<8x64xbf16>,
    %114 = vector.extract_strided_slice %32 {offsets = [104, 0], sizes = [8, 64], strides = [1, 1]} : vector<128x64xf32> to vector<8x64xf32>
    %115 = arith.truncf %114 : vector<8x64xf32> to vector<8x64xbf16>
    %c418 = arith.constant 418 : index
    %c0_71 = arith.constant 0 : index
    %116 = vector.load %arg12[%c418, %c0_71] : memref<512x64xbf16, #tpu.memory_space<vmem>>, vector<8x64xbf16>
    tpu.vector_store %arg12[%c418, %c0_71], %115 {strides = array<i32>} : memref<512x64xbf16, #tpu.memory_space<vmem>>, vector<8x64xbf16>,
    %117 = vector.extract_strided_slice %32 {offsets = [112, 0], sizes = [8, 64], strides = [1, 1]} : vector<128x64xf32> to vector<8x64xf32>
    %118 = arith.truncf %117 : vector<8x64xf32> to vector<8x64xbf16>
    %c434 = arith.constant 434 : index
    %c0_72 = arith.constant 0 : index
    %119 = vector.load %arg12[%c434, %c0_72] : memref<512x64xbf16, #tpu.memory_space<vmem>>, vector<8x64xbf16>
    tpu.vector_store %arg12[%c434, %c0_72], %118 {strides = array<i32>} : memref<512x64xbf16, #tpu.memory_space<vmem>>, vector<8x64xbf16>,
    %120 = vector.extract_strided_slice %32 {offsets = [120, 0], sizes = [8, 64], strides = [1, 1]} : vector<128x64xf32> to vector<8x64xf32>
    %121 = arith.truncf %120 : vector<8x64xf32> to vector<8x64xbf16>
    %c450 = arith.constant 450 : index
    %c0_73 = arith.constant 0 : index
    %122 = vector.load %arg12[%c450, %c0_73] : memref<512x64xbf16, #tpu.memory_space<vmem>>, vector<8x64xbf16>
    tpu.vector_store %arg12[%c450, %c0_73], %121 {strides = array<i32>} : memref<512x64xbf16, #tpu.memory_space<vmem>>, vector<8x64xbf16>,
    %c384_74 = arith.constant 384 : index
    %c0_75 = arith.constant 0 : index
    %123 = vector.load %arg12[%c384_74, %c0_75] : memref<512x64xbf16, #tpu.memory_space<vmem>>, vector<8x64xbf16>
    %c0_76 = arith.constant 0 : index
    %c0_77 = arith.constant 0 : index
    %124 = vector.load %arg13[%c0_76, %c0_77] : memref<32x1024xbf16, #tpu.memory_space<vmem>>, vector<8x64xbf16>
    tpu.vector_store %arg13[%c0_76, %c0_77], %123 {strides = array<i32>} : memref<32x1024xbf16, #tpu.memory_space<vmem>>, vector<8x64xbf16>,
    %c400_78 = arith.constant 400 : index
    %c0_79 = arith.constant 0 : index
    %125 = vector.load %arg12[%c400_78, %c0_79] : memref<512x64xbf16, #tpu.memory_space<vmem>>, vector<8x64xbf16>
    %c8 = arith.constant 8 : index
    %c0_80 = arith.constant 0 : index
    %126 = vector.load %arg13[%c8, %c0_80] : memref<32x1024xbf16, #tpu.memory_space<vmem>>, vector<8x64xbf16>
    tpu.vector_store %arg13[%c8, %c0_80], %125 {strides = array<i32>} : memref<32x1024xbf16, #tpu.memory_space<vmem>>, vector<8x64xbf16>,
    %c416_81 = arith.constant 416 : index
    %c0_82 = arith.constant 0 : index
    %127 = vector.load %arg12[%c416_81, %c0_82] : memref<512x64xbf16, #tpu.memory_space<vmem>>, vector<8x64xbf16>
    %c16_83 = arith.constant 16 : index
    %c0_84 = arith.constant 0 : index
    %128 = vector.load %arg13[%c16_83, %c0_84] : memref<32x1024xbf16, #tpu.memory_space<vmem>>, vector<8x64xbf16>
    tpu.vector_store %arg13[%c16_83, %c0_84], %127 {strides = array<i32>} : memref<32x1024xbf16, #tpu.memory_space<vmem>>, vector<8x64xbf16>,
    %c432_85 = arith.constant 432 : index
    %c0_86 = arith.constant 0 : index
    %129 = vector.load %arg12[%c432_85, %c0_86] : memref<512x64xbf16, #tpu.memory_space<vmem>>, vector<8x64xbf16>
    %c24 = arith.constant 24 : index
    %c0_87 = arith.constant 0 : index
    %130 = vector.load %arg13[%c24, %c0_87] : memref<32x1024xbf16, #tpu.memory_space<vmem>>, vector<8x64xbf16>
    tpu.vector_store %arg13[%c24, %c0_87], %129 {strides = array<i32>} : memref<32x1024xbf16, #tpu.memory_space<vmem>>, vector<8x64xbf16>,
    %c258 = arith.constant 258 : index
    %c0_88 = arith.constant 0 : index
    %131 = vector.load %arg12[%c258, %c0_88] : memref<512x64xbf16, #tpu.memory_space<vmem>>, vector<8x64xbf16>
    %c0_89 = arith.constant 0 : index
    %c64_90 = arith.constant 64 : index
    %132 = vector.load %arg13[%c0_89, %c64_90] : memref<32x1024xbf16, #tpu.memory_space<vmem>>, vector<8x64xbf16>
    tpu.vector_store %arg13[%c0_89, %c64_90], %131 {strides = array<i32>} : memref<32x1024xbf16, #tpu.memory_space<vmem>>, vector<8x64xbf16>,
    %c274_91 = arith.constant 274 : index
    %c0_92 = arith.constant 0 : index
    %133 = vector.load %arg12[%c274_91, %c0_92] : memref<512x64xbf16, #tpu.memory_space<vmem>>, vector<8x64xbf16>
    %c8_93 = arith.constant 8 : index
    %c64_94 = arith.constant 64 : index
    %134 = vector.load %arg13[%c8_93, %c64_94] : memref<32x1024xbf16, #tpu.memory_space<vmem>>, vector<8x64xbf16>
    tpu.vector_store %arg13[%c8_93, %c64_94], %133 {strides = array<i32>} : memref<32x1024xbf16, #tpu.memory_space<vmem>>, vector<8x64xbf16>,
    %c290_95 = arith.constant 290 : index
    %c0_96 = arith.constant 0 : index
    %135 = vector.load %arg12[%c290_95, %c0_96] : memref<512x64xbf16, #tpu.memory_space<vmem>>, vector<8x64xbf16>
    %c16_97 = arith.constant 16 : index
    %c64_98 = arith.constant 64 : index
    %136 = vector.load %arg13[%c16_97, %c64_98] : memref<32x1024xbf16, #tpu.memory_space<vmem>>, vector<8x64xbf16>
    tpu.vector_store %arg13[%c16_97, %c64_98], %135 {strides = array<i32>} : memref<32x1024xbf16, #tpu.memory_space<vmem>>, vector<8x64xbf16>,
    %c306_99 = arith.constant 306 : index
    %c0_100 = arith.constant 0 : index
    %137 = vector.load %arg12[%c306_99, %c0_100] : memref<512x64xbf16, #tpu.memory_space<vmem>>, vector<8x64xbf16>
    %c24_101 = arith.constant 24 : index
    %c64_102 = arith.constant 64 : index
    %138 = vector.load %arg13[%c24_101, %c64_102] : memref<32x1024xbf16, #tpu.memory_space<vmem>>, vector<8x64xbf16>
    tpu.vector_store %arg13[%c24_101, %c64_102], %137 {strides = array<i32>} : memref<32x1024xbf16, #tpu.memory_space<vmem>>, vector<8x64xbf16>,
    %c386 = arith.constant 386 : index
    %c0_103 = arith.constant 0 : index
    %139 = vector.load %arg12[%c386, %c0_103] : memref<512x64xbf16, #tpu.memory_space<vmem>>, vector<8x64xbf16>
    %c0_104 = arith.constant 0 : index
    %c128_105 = arith.constant 128 : index
    %140 = vector.load %arg13[%c0_104, %c128_105] : memref<32x1024xbf16, #tpu.memory_space<vmem>>, vector<8x64xbf16>
    tpu.vector_store %arg13[%c0_104, %c128_105], %139 {strides = array<i32>} : memref<32x1024xbf16, #tpu.memory_space<vmem>>, vector<8x64xbf16>,
    %c402_106 = arith.constant 402 : index
    %c0_107 = arith.constant 0 : index
    %141 = vector.load %arg12[%c402_106, %c0_107] : memref<512x64xbf16, #tpu.memory_space<vmem>>, vector<8x64xbf16>
    %c8_108 = arith.constant 8 : index
    %c128_109 = arith.constant 128 : index
    %142 = vector.load %arg13[%c8_108, %c128_109] : memref<32x1024xbf16, #tpu.memory_space<vmem>>, vector<8x64xbf16>
    tpu.vector_store %arg13[%c8_108, %c128_109], %141 {strides = array<i32>} : memref<32x1024xbf16, #tpu.memory_space<vmem>>, vector<8x64xbf16>,
    %c418_110 = arith.constant 418 : index
    %c0_111 = arith.constant 0 : index
    %143 = vector.load %arg12[%c418_110, %c0_111] : memref<512x64xbf16, #tpu.memory_space<vmem>>, vector<8x64xbf16>
    %c16_112 = arith.constant 16 : index
    %c128_113 = arith.constant 128 : index
    %144 = vector.load %arg13[%c16_112, %c128_113] : memref<32x1024xbf16, #tpu.memory_space<vmem>>, vector<8x64xbf16>
    tpu.vector_store %arg13[%c16_112, %c128_113], %143 {strides = array<i32>} : memref<32x1024xbf16, #tpu.memory_space<vmem>>, vector<8x64xbf16>,
    %c434_114 = arith.constant 434 : index
    %c0_115 = arith.constant 0 : index
    %145 = vector.load %arg12[%c434_114, %c0_115] : memref<512x64xbf16, #tpu.memory_space<vmem>>, vector<8x64xbf16>
    %c24_116 = arith.constant 24 : index
    %c128_117 = arith.constant 128 : index
    %146 = vector.load %arg13[%c24_116, %c128_117] : memref<32x1024xbf16, #tpu.memory_space<vmem>>, vector<8x64xbf16>
    tpu.vector_store %arg13[%c24_116, %c128_117], %145 {strides = array<i32>} : memref<32x1024xbf16, #tpu.memory_space<vmem>>, vector<8x64xbf16>,
    %c260 = arith.constant 260 : index
    %c0_118 = arith.constant 0 : index
    %147 = vector.load %arg12[%c260, %c0_118] : memref<512x64xbf16, #tpu.memory_space<vmem>>, vector<8x64xbf16>
    %c0_119 = arith.constant 0 : index
    %c192_120 = arith.constant 192 : index
    %148 = vector.load %arg13[%c0_119, %c192_120] : memref<32x1024xbf16, #tpu.memory_space<vmem>>, vector<8x64xbf16>
    tpu.vector_store %arg13[%c0_119, %c192_120], %147 {strides = array<i32>} : memref<32x1024xbf16, #tpu.memory_space<vmem>>, vector<8x64xbf16>,
    %c276 = arith.constant 276 : index
    %c0_121 = arith.constant 0 : index
    %149 = vector.load %arg12[%c276, %c0_121] : memref<512x64xbf16, #tpu.memory_space<vmem>>, vector<8x64xbf16>
    %c8_122 = arith.constant 8 : index
    %c192_123 = arith.constant 192 : index
    %150 = vector.load %arg13[%c8_122, %c192_123] : memref<32x1024xbf16, #tpu.memory_space<vmem>>, vector<8x64xbf16>
    tpu.vector_store %arg13[%c8_122, %c192_123], %149 {strides = array<i32>} : memref<32x1024xbf16, #tpu.memory_space<vmem>>, vector<8x64xbf16>,
    %c292 = arith.constant 292 : index
    %c0_124 = arith.constant 0 : index
    %151 = vector.load %arg12[%c292, %c0_124] : memref<512x64xbf16, #tpu.memory_space<vmem>>, vector<8x64xbf16>
    %c16_125 = arith.constant 16 : index
    %c192_126 = arith.constant 192 : index
    %152 = vector.load %arg13[%c16_125, %c192_126] : memref<32x1024xbf16, #tpu.memory_space<vmem>>, vector<8x64xbf16>
    tpu.vector_store %arg13[%c16_125, %c192_126], %151 {strides = array<i32>} : memref<32x1024xbf16, #tpu.memory_space<vmem>>, vector<8x64xbf16>,
    %c308 = arith.constant 308 : index
    %c0_127 = arith.constant 0 : index
    %153 = vector.load %arg12[%c308, %c0_127] : memref<512x64xbf16, #tpu.memory_space<vmem>>, vector<8x64xbf16>
    %c24_128 = arith.constant 24 : index
    %c192_129 = arith.constant 192 : index
    %154 = vector.load %arg13[%c24_128, %c192_129] : memref<32x1024xbf16, #tpu.memory_space<vmem>>, vector<8x64xbf16>
    tpu.vector_store %arg13[%c24_128, %c192_129], %153 {strides = array<i32>} : memref<32x1024xbf16, #tpu.memory_space<vmem>>, vector<8x64xbf16>,
    %c144_130 = arith.constant 144 : index
    %c0_131 = arith.constant 0 : index
    %155 = vector.load %arg12[%c144_130, %c0_131] : memref<512x64xbf16, #tpu.memory_space<vmem>>, vector<8x64xbf16>
    %c0_132 = arith.constant 0 : index
    %c256_133 = arith.constant 256 : index
    %156 = vector.load %arg13[%c0_132, %c256_133] : memref<32x1024xbf16, #tpu.memory_space<vmem>>, vector<8x64xbf16>
    tpu.vector_store %arg13[%c0_132, %c256_133], %155 {strides = array<i32>} : memref<32x1024xbf16, #tpu.memory_space<vmem>>, vector<8x64xbf16>,
    %c160_134 = arith.constant 160 : index
    %c0_135 = arith.constant 0 : index
    %157 = vector.load %arg12[%c160_134, %c0_135] : memref<512x64xbf16, #tpu.memory_space<vmem>>, vector<8x64xbf16>
    %c8_136 = arith.constant 8 : index
    %c256_137 = arith.constant 256 : index
    %158 = vector.load %arg13[%c8_136, %c256_137] : memref<32x1024xbf16, #tpu.memory_space<vmem>>, vector<8x64xbf16>
    tpu.vector_store %arg13[%c8_136, %c256_137], %157 {strides = array<i32>} : memref<32x1024xbf16, #tpu.memory_space<vmem>>, vector<8x64xbf16>,
    %c176_138 = arith.constant 176 : index
    %c0_139 = arith.constant 0 : index
    %159 = vector.load %arg12[%c176_138, %c0_139] : memref<512x64xbf16, #tpu.memory_space<vmem>>, vector<8x64xbf16>
    %c16_140 = arith.constant 16 : index
    %c256_141 = arith.constant 256 : index
    %160 = vector.load %arg13[%c16_140, %c256_141] : memref<32x1024xbf16, #tpu.memory_space<vmem>>, vector<8x64xbf16>
    tpu.vector_store %arg13[%c16_140, %c256_141], %159 {strides = array<i32>} : memref<32x1024xbf16, #tpu.memory_space<vmem>>, vector<8x64xbf16>,
    %c192_142 = arith.constant 192 : index
    %c0_143 = arith.constant 0 : index
    %161 = vector.load %arg12[%c192_142, %c0_143] : memref<512x64xbf16, #tpu.memory_space<vmem>>, vector<8x64xbf16>
    %c24_144 = arith.constant 24 : index
    %c256_145 = arith.constant 256 : index
    %162 = vector.load %arg13[%c24_144, %c256_145] : memref<32x1024xbf16, #tpu.memory_space<vmem>>, vector<8x64xbf16>
    tpu.vector_store %arg13[%c24_144, %c256_145], %161 {strides = array<i32>} : memref<32x1024xbf16, #tpu.memory_space<vmem>>, vector<8x64xbf16>,
    %c18_146 = arith.constant 18 : index
    %c0_147 = arith.constant 0 : index
    %163 = vector.load %arg12[%c18_146, %c0_147] : memref<512x64xbf16, #tpu.memory_space<vmem>>, vector<8x64xbf16>
    %c0_148 = arith.constant 0 : index
    %c320_149 = arith.constant 320 : index
    %164 = vector.load %arg13[%c0_148, %c320_149] : memref<32x1024xbf16, #tpu.memory_space<vmem>>, vector<8x64xbf16>
    tpu.vector_store %arg13[%c0_148, %c320_149], %163 {strides = array<i32>} : memref<32x1024xbf16, #tpu.memory_space<vmem>>, vector<8x64xbf16>,
    %c34_150 = arith.constant 34 : index
    %c0_151 = arith.constant 0 : index
    %165 = vector.load %arg12[%c34_150, %c0_151] : memref<512x64xbf16, #tpu.memory_space<vmem>>, vector<8x64xbf16>
    %c8_152 = arith.constant 8 : index
    %c320_153 = arith.constant 320 : index
    %166 = vector.load %arg13[%c8_152, %c320_153] : memref<32x1024xbf16, #tpu.memory_space<vmem>>, vector<8x64xbf16>
    tpu.vector_store %arg13[%c8_152, %c320_153], %165 {strides = array<i32>} : memref<32x1024xbf16, #tpu.memory_space<vmem>>, vector<8x64xbf16>,
    %c50_154 = arith.constant 50 : index
    %c0_155 = arith.constant 0 : index
    %167 = vector.load %arg12[%c50_154, %c0_155] : memref<512x64xbf16, #tpu.memory_space<vmem>>, vector<8x64xbf16>
    %c16_156 = arith.constant 16 : index
    %c320_157 = arith.constant 320 : index
    %168 = vector.load %arg13[%c16_156, %c320_157] : memref<32x1024xbf16, #tpu.memory_space<vmem>>, vector<8x64xbf16>
    tpu.vector_store %arg13[%c16_156, %c320_157], %167 {strides = array<i32>} : memref<32x1024xbf16, #tpu.memory_space<vmem>>, vector<8x64xbf16>,
    %c66_158 = arith.constant 66 : index
    %c0_159 = arith.constant 0 : index
    %169 = vector.load %arg12[%c66_158, %c0_159] : memref<512x64xbf16, #tpu.memory_space<vmem>>, vector<8x64xbf16>
    %c24_160 = arith.constant 24 : index
    %c320_161 = arith.constant 320 : index
    %170 = vector.load %arg13[%c24_160, %c320_161] : memref<32x1024xbf16, #tpu.memory_space<vmem>>, vector<8x64xbf16>
    tpu.vector_store %arg13[%c24_160, %c320_161], %169 {strides = array<i32>} : memref<32x1024xbf16, #tpu.memory_space<vmem>>, vector<8x64xbf16>,
    %c146_162 = arith.constant 146 : index
    %c0_163 = arith.constant 0 : index
    %171 = vector.load %arg12[%c146_162, %c0_163] : memref<512x64xbf16, #tpu.memory_space<vmem>>, vector<8x64xbf16>
    %c0_164 = arith.constant 0 : index
    %c384_165 = arith.constant 384 : index
    %172 = vector.load %arg13[%c0_164, %c384_165] : memref<32x1024xbf16, #tpu.memory_space<vmem>>, vector<8x64xbf16>
    tpu.vector_store %arg13[%c0_164, %c384_165], %171 {strides = array<i32>} : memref<32x1024xbf16, #tpu.memory_space<vmem>>, vector<8x64xbf16>,
    %c162_166 = arith.constant 162 : index
    %c0_167 = arith.constant 0 : index
    %173 = vector.load %arg12[%c162_166, %c0_167] : memref<512x64xbf16, #tpu.memory_space<vmem>>, vector<8x64xbf16>
    %c8_168 = arith.constant 8 : index
    %c384_169 = arith.constant 384 : index
    %174 = vector.load %arg13[%c8_168, %c384_169] : memref<32x1024xbf16, #tpu.memory_space<vmem>>, vector<8x64xbf16>
    tpu.vector_store %arg13[%c8_168, %c384_169], %173 {strides = array<i32>} : memref<32x1024xbf16, #tpu.memory_space<vmem>>, vector<8x64xbf16>,
    %c178_170 = arith.constant 178 : index
    %c0_171 = arith.constant 0 : index
    %175 = vector.load %arg12[%c178_170, %c0_171] : memref<512x64xbf16, #tpu.memory_space<vmem>>, vector<8x64xbf16>
    %c16_172 = arith.constant 16 : index
    %c384_173 = arith.constant 384 : index
    %176 = vector.load %arg13[%c16_172, %c384_173] : memref<32x1024xbf16, #tpu.memory_space<vmem>>, vector<8x64xbf16>
    tpu.vector_store %arg13[%c16_172, %c384_173], %175 {strides = array<i32>} : memref<32x1024xbf16, #tpu.memory_space<vmem>>, vector<8x64xbf16>,
    %c194_174 = arith.constant 194 : index
    %c0_175 = arith.constant 0 : index
    %177 = vector.load %arg12[%c194_174, %c0_175] : memref<512x64xbf16, #tpu.memory_space<vmem>>, vector<8x64xbf16>
    %c24_176 = arith.constant 24 : index
    %c384_177 = arith.constant 384 : index
    %178 = vector.load %arg13[%c24_176, %c384_177] : memref<32x1024xbf16, #tpu.memory_space<vmem>>, vector<8x64xbf16>
    tpu.vector_store %arg13[%c24_176, %c384_177], %177 {strides = array<i32>} : memref<32x1024xbf16, #tpu.memory_space<vmem>>, vector<8x64xbf16>,
    %c20 = arith.constant 20 : index
    %c0_178 = arith.constant 0 : index
    %179 = vector.load %arg12[%c20, %c0_178] : memref<512x64xbf16, #tpu.memory_space<vmem>>, vector<8x64xbf16>
    %c0_179 = arith.constant 0 : index
    %c448_180 = arith.constant 448 : index
    %180 = vector.load %arg13[%c0_179, %c448_180] : memref<32x1024xbf16, #tpu.memory_space<vmem>>, vector<8x64xbf16>
    tpu.vector_store %arg13[%c0_179, %c448_180], %179 {strides = array<i32>} : memref<32x1024xbf16, #tpu.memory_space<vmem>>, vector<8x64xbf16>,
    %c36 = arith.constant 36 : index
    %c0_181 = arith.constant 0 : index
    %181 = vector.load %arg12[%c36, %c0_181] : memref<512x64xbf16, #tpu.memory_space<vmem>>, vector<8x64xbf16>
    %c8_182 = arith.constant 8 : index
    %c448_183 = arith.constant 448 : index
    %182 = vector.load %arg13[%c8_182, %c448_183] : memref<32x1024xbf16, #tpu.memory_space<vmem>>, vector<8x64xbf16>
    tpu.vector_store %arg13[%c8_182, %c448_183], %181 {strides = array<i32>} : memref<32x1024xbf16, #tpu.memory_space<vmem>>, vector<8x64xbf16>,
    %c52 = arith.constant 52 : index
    %c0_184 = arith.constant 0 : index
    %183 = vector.load %arg12[%c52, %c0_184] : memref<512x64xbf16, #tpu.memory_space<vmem>>, vector<8x64xbf16>
    %c16_185 = arith.constant 16 : index
    %c448_186 = arith.constant 448 : index
    %184 = vector.load %arg13[%c16_185, %c448_186] : memref<32x1024xbf16, #tpu.memory_space<vmem>>, vector<8x64xbf16>
    tpu.vector_store %arg13[%c16_185, %c448_186], %183 {strides = array<i32>} : memref<32x1024xbf16, #tpu.memory_space<vmem>>, vector<8x64xbf16>,
    %c68 = arith.constant 68 : index
    %c0_187 = arith.constant 0 : index
    %185 = vector.load %arg12[%c68, %c0_187] : memref<512x64xbf16, #tpu.memory_space<vmem>>, vector<8x64xbf16>
    %c24_188 = arith.constant 24 : index
    %c448_189 = arith.constant 448 : index
    %186 = vector.load %arg13[%c24_188, %c448_189] : memref<32x1024xbf16, #tpu.memory_space<vmem>>, vector<8x64xbf16>
    tpu.vector_store %arg13[%c24_188, %c448_189], %185 {strides = array<i32>} : memref<32x1024xbf16, #tpu.memory_space<vmem>>, vector<8x64xbf16>,
    %c400_190 = arith.constant 400 : index
    %c0_191 = arith.constant 0 : index
    %187 = vector.load %arg12[%c400_190, %c0_191] : memref<512x64xbf16, #tpu.memory_space<vmem>>, vector<8x64xbf16>
    %c0_192 = arith.constant 0 : index
    %c512 = arith.constant 512 : index
    %188 = vector.load %arg13[%c0_192, %c512] : memref<32x1024xbf16, #tpu.memory_space<vmem>>, vector<8x64xbf16>
    tpu.vector_store %arg13[%c0_192, %c512], %187 {strides = array<i32>} : memref<32x1024xbf16, #tpu.memory_space<vmem>>, vector<8x64xbf16>,
    %c416_193 = arith.constant 416 : index
    %c0_194 = arith.constant 0 : index
    %189 = vector.load %arg12[%c416_193, %c0_194] : memref<512x64xbf16, #tpu.memory_space<vmem>>, vector<8x64xbf16>
    %c8_195 = arith.constant 8 : index
    %c512_196 = arith.constant 512 : index
    %190 = vector.load %arg13[%c8_195, %c512_196] : memref<32x1024xbf16, #tpu.memory_space<vmem>>, vector<8x64xbf16>
    tpu.vector_store %arg13[%c8_195, %c512_196], %189 {strides = array<i32>} : memref<32x1024xbf16, #tpu.memory_space<vmem>>, vector<8x64xbf16>,
    %c432_197 = arith.constant 432 : index
    %c0_198 = arith.constant 0 : index
    %191 = vector.load %arg12[%c432_197, %c0_198] : memref<512x64xbf16, #tpu.memory_space<vmem>>, vector<8x64xbf16>
    %c16_199 = arith.constant 16 : index
    %c512_200 = arith.constant 512 : index
    %192 = vector.load %arg13[%c16_199, %c512_200] : memref<32x1024xbf16, #tpu.memory_space<vmem>>, vector<8x64xbf16>
    tpu.vector_store %arg13[%c16_199, %c512_200], %191 {strides = array<i32>} : memref<32x1024xbf16, #tpu.memory_space<vmem>>, vector<8x64xbf16>,
    %c448_201 = arith.constant 448 : index
    %c0_202 = arith.constant 0 : index
    %193 = vector.load %arg12[%c448_201, %c0_202] : memref<512x64xbf16, #tpu.memory_space<vmem>>, vector<8x64xbf16>
    %c24_203 = arith.constant 24 : index
    %c512_204 = arith.constant 512 : index
    %194 = vector.load %arg13[%c24_203, %c512_204] : memref<32x1024xbf16, #tpu.memory_space<vmem>>, vector<8x64xbf16>
    tpu.vector_store %arg13[%c24_203, %c512_204], %193 {strides = array<i32>} : memref<32x1024xbf16, #tpu.memory_space<vmem>>, vector<8x64xbf16>,
    %c274_205 = arith.constant 274 : index
    %c0_206 = arith.constant 0 : index
    %195 = vector.load %arg12[%c274_205, %c0_206] : memref<512x64xbf16, #tpu.memory_space<vmem>>, vector<8x64xbf16>
    %c0_207 = arith.constant 0 : index
    %c576 = arith.constant 576 : index
    %196 = vector.load %arg13[%c0_207, %c576] : memref<32x1024xbf16, #tpu.memory_space<vmem>>, vector<8x64xbf16>
    tpu.vector_store %arg13[%c0_207, %c576], %195 {strides = array<i32>} : memref<32x1024xbf16, #tpu.memory_space<vmem>>, vector<8x64xbf16>,
    %c290_208 = arith.constant 290 : index
    %c0_209 = arith.constant 0 : index
    %197 = vector.load %arg12[%c290_208, %c0_209] : memref<512x64xbf16, #tpu.memory_space<vmem>>, vector<8x64xbf16>
    %c8_210 = arith.constant 8 : index
    %c576_211 = arith.constant 576 : index
    %198 = vector.load %arg13[%c8_210, %c576_211] : memref<32x1024xbf16, #tpu.memory_space<vmem>>, vector<8x64xbf16>
    tpu.vector_store %arg13[%c8_210, %c576_211], %197 {strides = array<i32>} : memref<32x1024xbf16, #tpu.memory_space<vmem>>, vector<8x64xbf16>,
    %c306_212 = arith.constant 306 : index
    %c0_213 = arith.constant 0 : index
    %199 = vector.load %arg12[%c306_212, %c0_213] : memref<512x64xbf16, #tpu.memory_space<vmem>>, vector<8x64xbf16>
    %c16_214 = arith.constant 16 : index
    %c576_215 = arith.constant 576 : index
    %200 = vector.load %arg13[%c16_214, %c576_215] : memref<32x1024xbf16, #tpu.memory_space<vmem>>, vector<8x64xbf16>
    tpu.vector_store %arg13[%c16_214, %c576_215], %199 {strides = array<i32>} : memref<32x1024xbf16, #tpu.memory_space<vmem>>, vector<8x64xbf16>,
    %c322_216 = arith.constant 322 : index
    %c0_217 = arith.constant 0 : index
    %201 = vector.load %arg12[%c322_216, %c0_217] : memref<512x64xbf16, #tpu.memory_space<vmem>>, vector<8x64xbf16>
    %c24_218 = arith.constant 24 : index
    %c576_219 = arith.constant 576 : index
    %202 = vector.load %arg13[%c24_218, %c576_219] : memref<32x1024xbf16, #tpu.memory_space<vmem>>, vector<8x64xbf16>
    tpu.vector_store %arg13[%c24_218, %c576_219], %201 {strides = array<i32>} : memref<32x1024xbf16, #tpu.memory_space<vmem>>, vector<8x64xbf16>,
    %c402_220 = arith.constant 402 : index
    %c0_221 = arith.constant 0 : index
    %203 = vector.load %arg12[%c402_220, %c0_221] : memref<512x64xbf16, #tpu.memory_space<vmem>>, vector<8x64xbf16>
    %c0_222 = arith.constant 0 : index
    %c640 = arith.constant 640 : index
    %204 = vector.load %arg13[%c0_222, %c640] : memref<32x1024xbf16, #tpu.memory_space<vmem>>, vector<8x64xbf16>
    tpu.vector_store %arg13[%c0_222, %c640], %203 {strides = array<i32>} : memref<32x1024xbf16, #tpu.memory_space<vmem>>, vector<8x64xbf16>,
    %c418_223 = arith.constant 418 : index
    %c0_224 = arith.constant 0 : index
    %205 = vector.load %arg12[%c418_223, %c0_224] : memref<512x64xbf16, #tpu.memory_space<vmem>>, vector<8x64xbf16>
    %c8_225 = arith.constant 8 : index
    %c640_226 = arith.constant 640 : index
    %206 = vector.load %arg13[%c8_225, %c640_226] : memref<32x1024xbf16, #tpu.memory_space<vmem>>, vector<8x64xbf16>
    tpu.vector_store %arg13[%c8_225, %c640_226], %205 {strides = array<i32>} : memref<32x1024xbf16, #tpu.memory_space<vmem>>, vector<8x64xbf16>,
    %c434_227 = arith.constant 434 : index
    %c0_228 = arith.constant 0 : index
    %207 = vector.load %arg12[%c434_227, %c0_228] : memref<512x64xbf16, #tpu.memory_space<vmem>>, vector<8x64xbf16>
    %c16_229 = arith.constant 16 : index
    %c640_230 = arith.constant 640 : index
    %208 = vector.load %arg13[%c16_229, %c640_230] : memref<32x1024xbf16, #tpu.memory_space<vmem>>, vector<8x64xbf16>
    tpu.vector_store %arg13[%c16_229, %c640_230], %207 {strides = array<i32>} : memref<32x1024xbf16, #tpu.memory_space<vmem>>, vector<8x64xbf16>,
    %c450_231 = arith.constant 450 : index
    %c0_232 = arith.constant 0 : index
    %209 = vector.load %arg12[%c450_231, %c0_232] : memref<512x64xbf16, #tpu.memory_space<vmem>>, vector<8x64xbf16>
    %c24_233 = arith.constant 24 : index
    %c640_234 = arith.constant 640 : index
    %210 = vector.load %arg13[%c24_233, %c640_234] : memref<32x1024xbf16, #tpu.memory_space<vmem>>, vector<8x64xbf16>
    tpu.vector_store %arg13[%c24_233, %c640_234], %209 {strides = array<i32>} : memref<32x1024xbf16, #tpu.memory_space<vmem>>, vector<8x64xbf16>,
    %c276_235 = arith.constant 276 : index
    %c0_236 = arith.constant 0 : index
    %211 = vector.load %arg12[%c276_235, %c0_236] : memref<512x64xbf16, #tpu.memory_space<vmem>>, vector<8x64xbf16>
    %c0_237 = arith.constant 0 : index
    %c704 = arith.constant 704 : index
    %212 = vector.load %arg13[%c0_237, %c704] : memref<32x1024xbf16, #tpu.memory_space<vmem>>, vector<8x64xbf16>
    tpu.vector_store %arg13[%c0_237, %c704], %211 {strides = array<i32>} : memref<32x1024xbf16, #tpu.memory_space<vmem>>, vector<8x64xbf16>,
    %c292_238 = arith.constant 292 : index
    %c0_239 = arith.constant 0 : index
    %213 = vector.load %arg12[%c292_238, %c0_239] : memref<512x64xbf16, #tpu.memory_space<vmem>>, vector<8x64xbf16>
    %c8_240 = arith.constant 8 : index
    %c704_241 = arith.constant 704 : index
    %214 = vector.load %arg13[%c8_240, %c704_241] : memref<32x1024xbf16, #tpu.memory_space<vmem>>, vector<8x64xbf16>
    tpu.vector_store %arg13[%c8_240, %c704_241], %213 {strides = array<i32>} : memref<32x1024xbf16, #tpu.memory_space<vmem>>, vector<8x64xbf16>,
    %c308_242 = arith.constant 308 : index
    %c0_243 = arith.constant 0 : index
    %215 = vector.load %arg12[%c308_242, %c0_243] : memref<512x64xbf16, #tpu.memory_space<vmem>>, vector<8x64xbf16>
    %c16_244 = arith.constant 16 : index
    %c704_245 = arith.constant 704 : index
    %216 = vector.load %arg13[%c16_244, %c704_245] : memref<32x1024xbf16, #tpu.memory_space<vmem>>, vector<8x64xbf16>
    tpu.vector_store %arg13[%c16_244, %c704_245], %215 {strides = array<i32>} : memref<32x1024xbf16, #tpu.memory_space<vmem>>, vector<8x64xbf16>,
    %c324 = arith.constant 324 : index
    %c0_246 = arith.constant 0 : index
    %217 = vector.load %arg12[%c324, %c0_246] : memref<512x64xbf16, #tpu.memory_space<vmem>>, vector<8x64xbf16>
    %c24_247 = arith.constant 24 : index
    %c704_248 = arith.constant 704 : index
    %218 = vector.load %arg13[%c24_247, %c704_248] : memref<32x1024xbf16, #tpu.memory_space<vmem>>, vector<8x64xbf16>
    tpu.vector_store %arg13[%c24_247, %c704_248], %217 {strides = array<i32>} : memref<32x1024xbf16, #tpu.memory_space<vmem>>, vector<8x64xbf16>,
    %c160_249 = arith.constant 160 : index
    %c0_250 = arith.constant 0 : index
    %219 = vector.load %arg12[%c160_249, %c0_250] : memref<512x64xbf16, #tpu.memory_space<vmem>>, vector<8x64xbf16>
    %c0_251 = arith.constant 0 : index
    %c768 = arith.constant 768 : index
    %220 = vector.load %arg13[%c0_251, %c768] : memref<32x1024xbf16, #tpu.memory_space<vmem>>, vector<8x64xbf16>
    tpu.vector_store %arg13[%c0_251, %c768], %219 {strides = array<i32>} : memref<32x1024xbf16, #tpu.memory_space<vmem>>, vector<8x64xbf16>,
    %c176_252 = arith.constant 176 : index
    %c0_253 = arith.constant 0 : index
    %221 = vector.load %arg12[%c176_252, %c0_253] : memref<512x64xbf16, #tpu.memory_space<vmem>>, vector<8x64xbf16>
    %c8_254 = arith.constant 8 : index
    %c768_255 = arith.constant 768 : index
    %222 = vector.load %arg13[%c8_254, %c768_255] : memref<32x1024xbf16, #tpu.memory_space<vmem>>, vector<8x64xbf16>
    tpu.vector_store %arg13[%c8_254, %c768_255], %221 {strides = array<i32>} : memref<32x1024xbf16, #tpu.memory_space<vmem>>, vector<8x64xbf16>,
    %c192_256 = arith.constant 192 : index
    %c0_257 = arith.constant 0 : index
    %223 = vector.load %arg12[%c192_256, %c0_257] : memref<512x64xbf16, #tpu.memory_space<vmem>>, vector<8x64xbf16>
    %c16_258 = arith.constant 16 : index
    %c768_259 = arith.constant 768 : index
    %224 = vector.load %arg13[%c16_258, %c768_259] : memref<32x1024xbf16, #tpu.memory_space<vmem>>, vector<8x64xbf16>
    tpu.vector_store %arg13[%c16_258, %c768_259], %223 {strides = array<i32>} : memref<32x1024xbf16, #tpu.memory_space<vmem>>, vector<8x64xbf16>,
    %c208_260 = arith.constant 208 : index
    %c0_261 = arith.constant 0 : index
    %225 = vector.load %arg12[%c208_260, %c0_261] : memref<512x64xbf16, #tpu.memory_space<vmem>>, vector<8x64xbf16>
    %c24_262 = arith.constant 24 : index
    %c768_263 = arith.constant 768 : index
    %226 = vector.load %arg13[%c24_262, %c768_263] : memref<32x1024xbf16, #tpu.memory_space<vmem>>, vector<8x64xbf16>
    tpu.vector_store %arg13[%c24_262, %c768_263], %225 {strides = array<i32>} : memref<32x1024xbf16, #tpu.memory_space<vmem>>, vector<8x64xbf16>,
    %c34_264 = arith.constant 34 : index
    %c0_265 = arith.constant 0 : index
    %227 = vector.load %arg12[%c34_264, %c0_265] : memref<512x64xbf16, #tpu.memory_space<vmem>>, vector<8x64xbf16>
    %c0_266 = arith.constant 0 : index
    %c832 = arith.constant 832 : index
    %228 = vector.load %arg13[%c0_266, %c832] : memref<32x1024xbf16, #tpu.memory_space<vmem>>, vector<8x64xbf16>
    tpu.vector_store %arg13[%c0_266, %c832], %227 {strides = array<i32>} : memref<32x1024xbf16, #tpu.memory_space<vmem>>, vector<8x64xbf16>,
    %c50_267 = arith.constant 50 : index
    %c0_268 = arith.constant 0 : index
    %229 = vector.load %arg12[%c50_267, %c0_268] : memref<512x64xbf16, #tpu.memory_space<vmem>>, vector<8x64xbf16>
    %c8_269 = arith.constant 8 : index
    %c832_270 = arith.constant 832 : index
    %230 = vector.load %arg13[%c8_269, %c832_270] : memref<32x1024xbf16, #tpu.memory_space<vmem>>, vector<8x64xbf16>
    tpu.vector_store %arg13[%c8_269, %c832_270], %229 {strides = array<i32>} : memref<32x1024xbf16, #tpu.memory_space<vmem>>, vector<8x64xbf16>,
    %c66_271 = arith.constant 66 : index
    %c0_272 = arith.constant 0 : index
    %231 = vector.load %arg12[%c66_271, %c0_272] : memref<512x64xbf16, #tpu.memory_space<vmem>>, vector<8x64xbf16>
    %c16_273 = arith.constant 16 : index
    %c832_274 = arith.constant 832 : index
    %232 = vector.load %arg13[%c16_273, %c832_274] : memref<32x1024xbf16, #tpu.memory_space<vmem>>, vector<8x64xbf16>
    tpu.vector_store %arg13[%c16_273, %c832_274], %231 {strides = array<i32>} : memref<32x1024xbf16, #tpu.memory_space<vmem>>, vector<8x64xbf16>,
    %c82 = arith.constant 82 : index
    %c0_275 = arith.constant 0 : index
    %233 = vector.load %arg12[%c82, %c0_275] : memref<512x64xbf16, #tpu.memory_space<vmem>>, vector<8x64xbf16>
    %c24_276 = arith.constant 24 : index
    %c832_277 = arith.constant 832 : index
    %234 = vector.load %arg13[%c24_276, %c832_277] : memref<32x1024xbf16, #tpu.memory_space<vmem>>, vector<8x64xbf16>
    tpu.vector_store %arg13[%c24_276, %c832_277], %233 {strides = array<i32>} : memref<32x1024xbf16, #tpu.memory_space<vmem>>, vector<8x64xbf16>,
    %c162_278 = arith.constant 162 : index
    %c0_279 = arith.constant 0 : index
    %235 = vector.load %arg12[%c162_278, %c0_279] : memref<512x64xbf16, #tpu.memory_space<vmem>>, vector<8x64xbf16>
    %c0_280 = arith.constant 0 : index
    %c896 = arith.constant 896 : index
    %236 = vector.load %arg13[%c0_280, %c896] : memref<32x1024xbf16, #tpu.memory_space<vmem>>, vector<8x64xbf16>
    tpu.vector_store %arg13[%c0_280, %c896], %235 {strides = array<i32>} : memref<32x1024xbf16, #tpu.memory_space<vmem>>, vector<8x64xbf16>,
    %c178_281 = arith.constant 178 : index
    %c0_282 = arith.constant 0 : index
    %237 = vector.load %arg12[%c178_281, %c0_282] : memref<512x64xbf16, #tpu.memory_space<vmem>>, vector<8x64xbf16>
    %c8_283 = arith.constant 8 : index
    %c896_284 = arith.constant 896 : index
    %238 = vector.load %arg13[%c8_283, %c896_284] : memref<32x1024xbf16, #tpu.memory_space<vmem>>, vector<8x64xbf16>
    tpu.vector_store %arg13[%c8_283, %c896_284], %237 {strides = array<i32>} : memref<32x1024xbf16, #tpu.memory_space<vmem>>, vector<8x64xbf16>,
    %c194_285 = arith.constant 194 : index
    %c0_286 = arith.constant 0 : index
    %239 = vector.load %arg12[%c194_285, %c0_286] : memref<512x64xbf16, #tpu.memory_space<vmem>>, vector<8x64xbf16>
    %c16_287 = arith.constant 16 : index
    %c896_288 = arith.constant 896 : index
    %240 = vector.load %arg13[%c16_287, %c896_288] : memref<32x1024xbf16, #tpu.memory_space<vmem>>, vector<8x64xbf16>
    tpu.vector_store %arg13[%c16_287, %c896_288], %239 {strides = array<i32>} : memref<32x1024xbf16, #tpu.memory_space<vmem>>, vector<8x64xbf16>,
    %c210 = arith.constant 210 : index
    %c0_289 = arith.constant 0 : index
    %241 = vector.load %arg12[%c210, %c0_289] : memref<512x64xbf16, #tpu.memory_space<vmem>>, vector<8x64xbf16>
    %c24_290 = arith.constant 24 : index
    %c896_291 = arith.constant 896 : index
    %242 = vector.load %arg13[%c24_290, %c896_291] : memref<32x1024xbf16, #tpu.memory_space<vmem>>, vector<8x64xbf16>
    tpu.vector_store %arg13[%c24_290, %c896_291], %241 {strides = array<i32>} : memref<32x1024xbf16, #tpu.memory_space<vmem>>, vector<8x64xbf16>,
    %c36_292 = arith.constant 36 : index
    %c0_293 = arith.constant 0 : index
    %243 = vector.load %arg12[%c36_292, %c0_293] : memref<512x64xbf16, #tpu.memory_space<vmem>>, vector<8x64xbf16>
    %c0_294 = arith.constant 0 : index
    %c960 = arith.constant 960 : index
    %244 = vector.load %arg13[%c0_294, %c960] : memref<32x1024xbf16, #tpu.memory_space<vmem>>, vector<8x64xbf16>
    tpu.vector_store %arg13[%c0_294, %c960], %243 {strides = array<i32>} : memref<32x1024xbf16, #tpu.memory_space<vmem>>, vector<8x64xbf16>,
    %c52_295 = arith.constant 52 : index
    %c0_296 = arith.constant 0 : index
    %245 = vector.load %arg12[%c52_295, %c0_296] : memref<512x64xbf16, #tpu.memory_space<vmem>>, vector<8x64xbf16>
    %c8_297 = arith.constant 8 : index
    %c960_298 = arith.constant 960 : index
    %246 = vector.load %arg13[%c8_297, %c960_298] : memref<32x1024xbf16, #tpu.memory_space<vmem>>, vector<8x64xbf16>
    tpu.vector_store %arg13[%c8_297, %c960_298], %245 {strides = array<i32>} : memref<32x1024xbf16, #tpu.memory_space<vmem>>, vector<8x64xbf16>,
    %c68_299 = arith.constant 68 : index
    %c0_300 = arith.constant 0 : index
    %247 = vector.load %arg12[%c68_299, %c0_300] : memref<512x64xbf16, #tpu.memory_space<vmem>>, vector<8x64xbf16>
    %c16_301 = arith.constant 16 : index
    %c960_302 = arith.constant 960 : index
    %248 = vector.load %arg13[%c16_301, %c960_302] : memref<32x1024xbf16, #tpu.memory_space<vmem>>, vector<8x64xbf16>
    tpu.vector_store %arg13[%c16_301, %c960_302], %247 {strides = array<i32>} : memref<32x1024xbf16, #tpu.memory_space<vmem>>, vector<8x64xbf16>,
    %c84 = arith.constant 84 : index
    %c0_303 = arith.constant 0 : index
    %249 = vector.load %arg12[%c84, %c0_303] : memref<512x64xbf16, #tpu.memory_space<vmem>>, vector<8x64xbf16>
    %c24_304 = arith.constant 24 : index
    %c960_305 = arith.constant 960 : index
    %250 = vector.load %arg13[%c24_304, %c960_305] : memref<32x1024xbf16, #tpu.memory_space<vmem>>, vector<8x64xbf16>
    tpu.vector_store %arg13[%c24_304, %c960_305], %249 {strides = array<i32>} : memref<32x1024xbf16, #tpu.memory_space<vmem>>, vector<8x64xbf16>,
    %c0_306 = arith.constant 0 : index
    %c0_307 = arith.constant 0 : index
    %251 = vector.load %arg13[%c0_306, %c0_307] : memref<32x1024xbf16, #tpu.memory_space<vmem>>, vector<32x1024xbf16>
    %c0_308 = arith.constant 0 : index
    %c0_309 = arith.constant 0 : index
    %252 = vector.load %arg4[%c0_308, %c0_309] : memref<1024x128xbf16, #tpu.memory_space<vmem>>, vector<1024x128xbf16>
    %cst_310 = arith.constant dense<0.000000e+00> : vector<32x128xf32>
    %253 = tpu.matmul %251, %252, %cst_310 {dimension_numbers = #tpu.dot_dimension_numbers<[1], [0], [0], [1], [0, 0, 1, 1], [], []>} : vector<32x1024xbf16>, vector<1024x128xbf16>, vector<32x128xf32> -> vector<32x128xf32>
    %cst_311 = arith.constant dense<0.000000e+00> : vector<128xf32>
    %254 = vector.multi_reduction <add>, %253, %cst_311 [0] : vector<32x128xf32> to vector<128xf32>
    %255 = vector.shape_cast %254 : vector<128xf32> to vector<1x128xf32>
    %256 = arith.mulf %253, %253 : vector<32x128xf32>
    %cst_312 = arith.constant dense<0.000000e+00> : vector<128xf32>
    %257 = vector.multi_reduction <add>, %256, %cst_312 [0] : vector<32x128xf32> to vector<128xf32>
    %258 = vector.shape_cast %257 : vector<128xf32> to vector<1x128xf32>
    %c0_313 = arith.constant 0 : index
    %c0_314 = arith.constant 0 : index
    %259 = vector.load %arg5[%c0_313, %c0_314] : memref<1x128xf32, #tpu.memory_space<vmem>>, vector<1x128xf32>
    %c0_315 = arith.constant 0 : index
    %c0_316 = arith.constant 0 : index
    %260 = vector.load %arg6[%c0_315, %c0_316] : memref<1x128xf32, #tpu.memory_space<vmem>>, vector<1x128xf32>
    %cst_317 = arith.constant 3.125000e-02 : f32
    %261 = vector.broadcast %cst_317 : f32 to vector<1x128xf32>
    %262 = arith.mulf %255, %261 : vector<1x128xf32>
    %cst_318 = arith.constant 3.125000e-02 : f32
    %263 = vector.broadcast %cst_318 : f32 to vector<1x128xf32>
    %264 = arith.mulf %258, %263 : vector<1x128xf32>
    %265 = arith.mulf %262, %262 : vector<1x128xf32>
    %266 = arith.subf %264, %265 : vector<1x128xf32>
    %cst_319 = arith.constant 0.000000e+00 : f32
    %267 = vector.broadcast %cst_319 : f32 to vector<1x128xf32>
    %268 = arith.maximumf %266, %267 : vector<1x128xf32>
    %cst_320 = arith.constant 9.99999974E-6 : f32
    %269 = vector.broadcast %cst_320 : f32 to vector<1x128xf32>
    %270 = arith.addf %268, %269 : vector<1x128xf32>
    %271 = math.rsqrt %270 : vector<1x128xf32>
    %272 = arith.mulf %259, %271 : vector<1x128xf32>
    %273 = arith.mulf %262, %272 : vector<1x128xf32>
    %274 = arith.subf %260, %273 : vector<1x128xf32>
    %275 = vector.broadcast %272 : vector<1x128xf32> to vector<32x128xf32>
    %276 = arith.mulf %253, %275 : vector<32x128xf32>
    %277 = vector.broadcast %274 : vector<1x128xf32> to vector<32x128xf32>
    %278 = arith.addf %276, %277 : vector<32x128xf32>
    %cst_321 = arith.constant 0.000000e+00 : f32
    %279 = vector.broadcast %cst_321 : f32 to vector<32x128xf32>
    %280 = arith.cmpf oge, %278, %279 : vector<32x128xf32>
    %cst_322 = arith.constant 2.000000e-01 : f32
    %281 = vector.broadcast %cst_322 : f32 to vector<32x128xf32>
    %282 = arith.mulf %281, %278 : vector<32x128xf32>
    %283 = arith.select %280, %278, %282 : vector<32x128xi1>, vector<32x128xf32>
    %c0_323 = arith.constant 0 : index
    %c0_324 = arith.constant 0 : index
    %284 = vector.load %arg10[%c0_323, %c0_324] : memref<32x128xf32, #tpu.memory_space<vmem>>, vector<32x128xf32>
    tpu.vector_store %arg10[%c0_323, %c0_324], %283 {strides = array<i32>} : memref<32x128xf32, #tpu.memory_space<vmem>>, vector<32x128xf32>,
    %c0_325 = arith.constant 0 : index
    %c0_326 = arith.constant 0 : index
    %285 = vector.load %arg7[%c0_325, %c0_326] : memref<16x128xf32, #tpu.memory_space<vmem>>, vector<16x128xf32>
    %c0_327 = arith.constant 0 : index
    %c0_328 = arith.constant 0 : index
    %286 = vector.load %arg8[%c0_327, %c0_328] : memref<1x30xf32, #tpu.memory_space<vmem>>, vector<1x30xf32>
    %c0_329 = arith.constant 0 : index
    %c0_330 = arith.constant 0 : index
    %287 = vector.load %arg9[%c0_329, %c0_330] : memref<2x30xf32, #tpu.memory_space<vmem>>, vector<2x30xf32>
    %288 = vector.shape_cast %285 : vector<16x128xf32> to vector<16x1x128xf32>
    %289 = vector.shape_cast %288 : vector<16x1x128xf32> to vector<16x1x128xf32>
    %290 = vector.broadcast %289 : vector<16x1x128xf32> to vector<16x2x128xf32>
    %291 = vector.shape_cast %290 : vector<16x2x128xf32> to vector<32x128xf32>
    %292 = arith.mulf %283, %291 : vector<32x128xf32>
    %cst_331 = arith.constant dense<0.000000e+00> : vector<32xf32>
    %293 = vector.multi_reduction <add>, %292, %cst_331 [1] : vector<32x128xf32> to vector<32xf32>
    %294 = vector.shape_cast %293 : vector<32xf32> to vector<32x1xf32>
    %295 = vector.extract_strided_slice %294 {offsets = [0, 0], sizes = [16, 1], strides = [1, 1]} : vector<32x1xf32> to vector<16x1xf32>
    %296 = vector.extract_strided_slice %294 {offsets = [16, 0], sizes = [16, 1], strides = [1, 1]} : vector<32x1xf32> to vector<16x1xf32>
    %297 = arith.addf %295, %296 : vector<16x1xf32>
    %298 = vector.extract_strided_slice %297 {offsets = [0, 0], sizes = [8, 1], strides = [1, 1]} : vector<16x1xf32> to vector<8x1xf32>
    %299 = vector.extract_strided_slice %297 {offsets = [8, 0], sizes = [8, 1], strides = [1, 1]} : vector<16x1xf32> to vector<8x1xf32>
    %300 = arith.addf %298, %299 : vector<8x1xf32>
    %301 = vector.extract_strided_slice %300 {offsets = [0, 0], sizes = [4, 1], strides = [1, 1]} : vector<8x1xf32> to vector<4x1xf32>
    %302 = vector.extract_strided_slice %300 {offsets = [4, 0], sizes = [4, 1], strides = [1, 1]} : vector<8x1xf32> to vector<4x1xf32>
    %303 = arith.addf %301, %302 : vector<4x1xf32>
    %304 = vector.extract_strided_slice %303 {offsets = [0, 0], sizes = [2, 1], strides = [1, 1]} : vector<4x1xf32> to vector<2x1xf32>
    %305 = vector.extract_strided_slice %303 {offsets = [2, 0], sizes = [2, 1], strides = [1, 1]} : vector<4x1xf32> to vector<2x1xf32>
    %306 = arith.addf %304, %305 : vector<2x1xf32>
    %307 = vector.broadcast %286 : vector<1x30xf32> to vector<2x30xf32>
    %308 = arith.mulf %287, %307 : vector<2x30xf32>
    %cst_332 = arith.constant dense<0.000000e+00> : vector<2xf32>
    %309 = vector.multi_reduction <add>, %308, %cst_332 [1] : vector<2x30xf32> to vector<2xf32>
    %310 = vector.shape_cast %309 : vector<2xf32> to vector<2x1xf32>
    %311 = arith.addf %306, %310 : vector<2x1xf32>
    %cst_333 = arith.constant 0.000000e+00 : f32
    %312 = vector.broadcast %cst_333 : f32 to vector<2x1xf32>
    %313 = arith.subf %312, %311 : vector<2x1xf32>
    %314 = math.exp %313 : vector<2x1xf32>
    %cst_334 = arith.constant 1.000000e+00 : f32
    %315 = vector.broadcast %cst_334 : f32 to vector<2x1xf32>
    %316 = arith.addf %315, %314 : vector<2x1xf32>
    %317 = tpu.reciprocal %316 {approx = true} : vector<2x1xf32> -> vector<2x1xf32>
    %cst_335 = arith.constant 0.000000e+00 : f32
    %cst_336 = arith.constant 1.000000e+00 : f32
    %318 = vector.broadcast %cst_335 : f32 to vector<2x1xf32>
    %319 = arith.maximumf %318, %317 : vector<2x1xf32>
    %320 = vector.broadcast %cst_336 : f32 to vector<2x1xf32>
    %321 = arith.minimumf %320, %319 : vector<2x1xf32>
    %c0_337 = arith.constant 0 : index
    %c0_338 = arith.constant 0 : index
    %322 = vector.load %arg11[%c0_337, %c0_338] : memref<2x1xf32, #tpu.memory_space<vmem>>, vector<2x1xf32>
    tpu.vector_store %arg11[%c0_337, %c0_338], %321 {strides = array<i32>} : memref<2x1xf32, #tpu.memory_space<vmem>>, vector<2x1xf32>,
    return
  }
}

</mosaic_0001>

<bundles_post_ra>
// kernel: discriminator_forward.1
= control target key start
LH: loop header
LB: loop body
LE: loop exit
PB: predicated region body
PF: predicated region fallthrough
CT: control target
= control target key end

     0   :  { %vm102_vm0 = vcmask 130048   ;;  %vm224_vm1 = vcmask 523264   ;;  %v2300_v9 = vmov 0   ;;  %vm423_vm2 = vcmask 521221   ;;  %s3022_s1 = inlined_call_operand.vmem [shape: bf16[16,64], index: 1, kind: input, shape index: {}]   ;;  %s3023_s0 = inlined_call_operand.vmem [shape: bf16[128,16], index: 0, kind: input, shape index: {}]   ;;  %s3024_s4 = inlined_call_operand.vmem [shape: bf16[1024,128], index: 4, kind: input, shape index: {}]   ;;  %s3025_s2 = inlined_call_operand.vmem [shape: f32[1,64], index: 2, kind: input, shape index: {}]   ;;  %s3026_s3 = inlined_call_operand.vmem [shape: f32[1,64], index: 3, kind: input, shape index: {}]   ;;  %s3027_s7 = inlined_call_operand.vmem [shape: f32[16,128], index: 7, kind: input, shape index: {}]   ;;  %s3028_s5 = inlined_call_operand.vmem [shape: f32[1,128], index: 5, kind: input, shape index: {}]   ;;  %s3029_s6 = inlined_call_operand.vmem [shape: f32[1,128], index: 6, kind: input, shape index: {}]   ;;  %s3030_s8 = inlined_call_operand.vmem [shape: f32[1,30], index: 8, kind: input, shape index: {}]   ;;  %s3031_s9 = inlined_call_operand.vmem [shape: f32[2,30], index: 9, kind: input, shape index: {}]   ;;  %s3032_s10 = inlined_call_operand.vmem [shape: f32[32,128], index: 10, kind: output, shape index: {0}]   ;;  %s3033_s11 = inlined_call_operand.vmem [shape: f32[2,1], index: 11, kind: output, shape index: {1}]  }
   0x1   :  { %v2217_v0 = vld [vmem:[%s3022_s1] sm:$0xff]   ;;  %v2219_v2 = vld [vmem:[%s3023_s0 + $0x8] sm:$0xff]   ;;  %v2220_v3 = vld [vmem:[%s3023_s0 + $0x10] sm:$0xff]   ;;  %441 = vst.msk [vmem:[#allocation2 + $0x80] sm:$0xff] %vm224_vm1, %v2300_v9  ;;  %vm421_vm3 = vcmask 516096   ;;  %vm543_vm4 = vcmask 519168  }
   0x2   :  { %v2218_v1 = vld [vmem:[%s3023_s0] sm:$0xff]   ;;  %2195 = vmatprep.subr.bf16.mxu0 %v2217_v0  ;;  %v2221_v4 = vld [vmem:[%s3023_s0 + $0x18] sm:$0xff]   ;;  %v2223_v6 = vld [vmem:[%s3023_s0 + $0x28] sm:$0xff]   ;;  %420 = vst.msk [vmem:[#allocation2 + $0x28] sm:$0xff] %vm224_vm1, %v2300_v9  ;;  %vm549_vm5 = vcmask 523268   ;;  %vm564_vm6 = vcmask 1043968  }
   0x3   :  { %2196 = vmatpush3.bf16.msra.mxu0 %v2217_v0  ;;  %2197 = vmatprep.mubr.msk.bf16.mxu0 %vm102_vm0, %v2218_v1  ;;  %v2222_v5 = vld [vmem:[%s3023_s0 + $0x20] sm:$0xff]   ;;  %v2224_v7 = vld [vmem:[%s3023_s0 + $0x30] sm:$0xff]   ;;  %v2225_v8 = vld [vmem:[%s3023_s0 + $0x38] sm:$0xff]   ;;  %432 = vst.msk [vmem:[#allocation2 + $0x68] sm:$0xff] %vm224_vm1, %v2300_v9  ;;  %s2301_s0 = smov 64   ;;  %vm572_vm7 = vcmask 1048068  }
   0x4   :  { %451 = vst.msk [vmem:[#allocation2 + $0xc0] sm:$0xff] %vm224_vm1, %v2300_v9  ;;  %vm465_vm8 = vcmask 520193  }
   0x5   :  { %444 = vst.msk [vmem:[#allocation2 + $0x88] sm:$0x20] %vm423_vm2, %v2300_v9  ;;  %424 = vst.msk [vmem:[#allocation2 + $0x8] sm:$0x20] %vm423_vm2, %v2300_v9 }
   0x6   :  { %2198 = vmatmul.mubr.msk.bf16.vlgmr.msra.gmra.mrb[0].mxu0 %vm102_vm0, %v2219_v2  ;;  %426 = vst.msk [vmem:[#allocation2 + $0x10] sm:$0x20] %vm423_vm2, %v2300_v9  ;;  %428 = vst.msk [vmem:[#allocation2 + $0x18] sm:$0x20] %vm423_vm2, %v2300_v9 }
   0x7   :  { %2201 = vmatprep.mubr.msk.bf16.mxu0 %vm102_vm0, %v2220_v3  ;;  %430 = vst.msk [vmem:[#allocation2 + $0x20] sm:$0x20] %vm423_vm2, %v2300_v9  ;;  %446 = vst.msk [vmem:[#allocation2 + $0x90] sm:$0x20] %vm423_vm2, %v2300_v9 }
   0x8   :  { %v558_v10 = vld [vmem:[#allocation2 + $0x80] sm:$0x1e]  ;;  %448 = vst.msk [vmem:[#allocation2 + $0x98] sm:$0x20] %vm423_vm2, %v2300_v9  ;;  %450 = vst.msk [vmem:[#allocation2 + $0xa0] sm:$0x20] %vm423_vm2, %v2300_v9 }
   0x9   :  { %v608_v11 = vld [vmem:[#allocation2 + $0x80] sm:$0x3c]  ;;  %v560_v12 = vrot.slane %v558_v10, 1  ;;  %v899_v14 = vld [vmem:[#allocation2 + $0x28] sm:$0x3c] }
   0xa   :  { %v610_v13 = vrot.slane %v608_v11, 2  ;;  %v901_v15 = vrot.slane %v899_v14, 6  ;;  %453 = vst.msk [vmem:[#allocation2 + $0xc8] sm:$0x1] %vm421_vm3, %v2300_v9  ;;  %433 = vst.msk [vmem:[#allocation2 + $0x48] sm:$0x1] %vm421_vm3, %v2300_v9 }
   0xb   :  { %561 = vrot.lane.b32.xlu1 %v560_v12, %s2301_s0  ;;  %435 = vst.msk [vmem:[#allocation2 + $0x50] sm:$0x1] %vm421_vm3, %v2300_v9  ;;  %437 = vst.msk [vmem:[#allocation2 + $0x58] sm:$0x1] %vm421_vm3, %v2300_v9 }
   0xc   :  { %611 = vrot.lane.b32.xlu0 %v610_v13, %s2301_s0  ;;  %439 = vst.msk [vmem:[#allocation2 + $0x60] sm:$0x1] %vm421_vm3, %v2300_v9  ;;  %455 = vst.msk [vmem:[#allocation2 + $0xd0] sm:$0x1] %vm421_vm3, %v2300_v9 }
   0xd   :  { %457 = vst.msk [vmem:[#allocation2 + $0xd8] sm:$0x1] %vm421_vm3, %v2300_v9  ;;  %459 = vst.msk [vmem:[#allocation2 + $0xe0] sm:$0x1] %vm421_vm3, %v2300_v9 }
   0xe   :  { %2202 = vmatmul.mubr.msk.bf16.gmra.mrb[4].mxu0 %vm102_vm0, %v2221_v4 }
   0xf   :  { %2205 = vmatprep.mubr.msk.bf16.mxu0 %vm102_vm0, %v2222_v5  ;;  %902 = vrot.lane.b32.xlu1 %v901_v15, %s2301_s0 }
  0x16   :  { %2206 = vmatmul.mubr.msk.bf16.gmra.mrb[8].mxu0 %vm102_vm0, %v2223_v6 }
  0x17   :  { %2209 = vmatprep.mubr.msk.bf16.mxu0 %vm102_vm0, %v2224_v7 }
  0x1e   :  { %2210 = vmatmul.mubr.msk.bf16.gmra.mrb[12].mxu0 %vm102_vm0, %v2225_v8 }
  0xd9   :  { %v2406_v16 = vpop.f32.mrb[0].mxu0 }
  0xda   :  { %v2408_v17 = vpop.f32.mrb[1].mxu0  ;;  %v264_v21 = vmul.f32 %v2406_v16, %v2406_v16  ;;  %v228_v26 = vsel %vm224_vm1, %v2406_v16, 0.0 }
  0xdb   :  { %v262_v18 = vmul.f32 %v2408_v17, %v2408_v17  ;;  %v2412_v19 = vpop.f32.mrb[2].mxu0  ;;  %v225_v22 = vsel %vm224_vm1, %v2408_v17, 0.0 }
  0xdc   :  { %v2414_v20 = vpop.f32.mrb[3].mxu0  ;;  %v265_v28 = vmul.f32 %v2412_v19, %v2412_v19  ;;  %v281_v32 = vsel %vm224_vm1, %v264_v21, 0.0  ;;  %v230_v33 = vsel %vm224_vm1, %v2412_v19, 0.0 }
  0xdd   :  { %v226_v23 = vsel %vm224_vm1, %v2414_v20, 0.0  ;;  %v263_v24 = vmul.f32 %v2414_v20, %v2414_v20  ;;  %v278_v27 = vsel %vm224_vm1, %v262_v18, 0.0 }
  0xde   :  { %v227_v25 = vadd.f32 %v226_v23, %v225_v22  ;;  %v283_v38 = vsel %vm224_vm1, %v265_v28, 0.0  ;;  %v542_v22 = vld [vmem:[#allocation2 + $0xc0] sm:$0xf] }
  0xdf   :  { %v279_v29 = vsel %vm224_vm1, %v263_v24, 0.0  ;;  %v2226_v24 = vld [vmem:[%s3024_s4 + $0x40] sm:$0xff]   ;;  %544 = vst.msk [vmem:[#allocation3] sm:$0xf] %vm543_vm4, %v542_v22 }
  0xe0   :  { %v229_v30 = vadd.f32 %v228_v26, %v227_v25  ;;  %v280_v31 = vadd.f32 %v279_v29, %v278_v27  ;;  %v588_v25 = vld [vmem:[#allocation2 + $0xc0] sm:$0x1e]  ;;  %2083 = vmatprep.subr.bf16.mxu1 %v2226_v24  ;;  %v2241_v24 = vld [vmem:[%s3024_s4 + $0x90] sm:$0xff]  }
  0xe1   :  { %v2433_v34 = vpop.f32.mrb[4].mxu0 }
  0xe2   :  { %v282_v35 = vadd.f32 %v281_v32, %v280_v31  ;;  %v2435_v36 = vpop.f32.mrb[5].mxu0  ;;  %v231_v37 = vadd.f32 %v230_v33, %v229_v30  ;;  %v268_v45 = vmul.f32 %v2433_v34, %v2433_v34  ;;  %v236_v51 = vsel %vm224_vm1, %v2433_v34, 0.0  ;;  %v2227_v33 = vld [vmem:[%s3024_s4] sm:$0xff]  }
  0xe3   :  { %v232_v39 = vsel %vm224_vm1, %v2435_v36, 0.0  ;;  %v266_v40 = vmul.f32 %v2435_v36, %v2435_v36  ;;  %v2442_v41 = vpop.f32.mrb[6].mxu0  ;;  %2084 = vmatpush3.bf16.msra.mxu1 %v2227_v33  ;;  %v2244_v33 = vld [vmem:[%s3024_s4 + $0x28] sm:$0xff]  }
  0xe4   :  { %v233_v42 = vadd.f32 %v232_v39, %v231_v37  ;;  %v284_v43 = vadd.f32 %v283_v38, %v282_v35  ;;  %v2444_v44 = vpop.f32.mrb[7].mxu0  ;;  %v269_v52 = vmul.f32 %v2442_v41, %v2442_v41  ;;  %v289_v56 = vsel %vm224_vm1, %v268_v45, 0.0  ;;  %v2228_v35 = vld [vmem:[%s3024_s4 + $0x48] sm:$0xff]  }
  0xe5   :  { %v285_v46 = vsel %vm224_vm1, %v266_v40, 0.0  ;;  %v234_v47 = vsel %vm224_vm1, %v2444_v44, 0.0  ;;  %v267_v48 = vmul.f32 %v2444_v44, %v2444_v44  ;;  %v238_v57 = vsel %vm224_vm1, %v2442_v41, 0.0  ;;  %2085 = vmatprep.subr.bf16.mxu1 %v2228_v35 }
  0xe6   :  { %v286_v49 = vadd.f32 %v285_v46, %v284_v43  ;;  %v235_v50 = vadd.f32 %v234_v47, %v233_v42  ;;  %v291_v62 = vsel %vm224_vm1, %v269_v52, 0.0  ;;  %v2229_v42 = vld [vmem:[%s3024_s4 + $0x8] sm:$0xff]  }
  0xe7   :  { %v287_v53 = vsel %vm224_vm1, %v267_v48, 0.0  ;;  %2086 = vmatpush3.bf16.msra.mxu1 %v2229_v42 }
  0xe8   :  { %v237_v54 = vadd.f32 %v236_v51, %v235_v50  ;;  %v288_v55 = vadd.f32 %v287_v53, %v286_v49  ;;  %v2230_v49 = vld [vmem:[%s3024_s4 + $0x50] sm:$0xff]   ;;  %v590_v50 = vrot.slane %v588_v25, 1  ;;  %v873_v25 = vld [vmem:[#allocation2 + $0x68] sm:$0x1e] }
  0xe9   :  { %v2461_v58 = vpop.f32.mrb[8].mxu0  ;;  %2087 = vmatprep.subr.bf16.mxu1 %v2230_v49 }
  0xea   :  { %v290_v59 = vadd.f32 %v289_v56, %v288_v55  ;;  %v2463_v60 = vpop.f32.mrb[9].mxu0  ;;  %v239_v61 = vadd.f32 %v238_v57, %v237_v54  ;;  %v272_v2 = vmul.f32 %v2461_v58, %v2461_v58  ;;  %v244_v12 = vsel %vm224_vm1, %v2461_v58, 0.0  ;;  %v2231_v57 = vld [vmem:[%s3024_s4 + $0xc0] sm:$0xff]   ;;  %592 = vst.msk [vmem:[#allocation3 + $0x8] sm:$0xf] %vm543_vm4, %v590_v50 }
  0xeb   :  { %v240_v63 = vsel %vm224_vm1, %v2463_v60, 0.0  ;;  %v270_v0 = vmul.f32 %v2463_v60, %v2463_v60  ;;  %v2470_v1 = vpop.f32.mrb[10].mxu0  ;;  %2111 = vmatprep.subr.bf16.mxu0 %v2231_v57 }
  0xec   :  { %v241_v3 = vadd.f32 %v240_v63, %v239_v61  ;;  %v292_v4 = vadd.f32 %v291_v62, %v290_v59  ;;  %v2474_v5 = vpop.f32.mrb[11].mxu0  ;;  %v273_v10 = vmul.f32 %v2470_v1, %v2470_v1  ;;  %v297_v14 = vsel %vm224_vm1, %v272_v2, 0.0  ;;  %v2232_v61 = vld [vmem:[%s3024_s4 + $0x10] sm:$0xff]  }
  0xed   :  { %v293_v6 = vsel %vm224_vm1, %v270_v0, 0.0  ;;  %v242_v7 = vsel %vm224_vm1, %v2474_v5, 0.0  ;;  %v271_v8 = vmul.f32 %v2474_v5, %v2474_v5  ;;  %v246_v15 = vsel %vm224_vm1, %v2470_v1, 0.0  ;;  %v2233_v0 = vld [vmem:[%s3024_s4 + $0x80] sm:$0xff]   ;;  %2088 = vmatpush3.bf16.msra.mxu1 %v2232_v61 }
  0xee   :  { %v294_v9 = vadd.f32 %v293_v6, %v292_v4  ;;  %v243_v11 = vadd.f32 %v242_v7, %v241_v3  ;;  %v299_v26 = vsel %vm224_vm1, %v273_v10, 0.0  ;;  %v2234_v3 = vld [vmem:[%s3024_s4 + $0x58] sm:$0xff]   ;;  %2112 = vmatpush3.bf16.msra.mxu0 %v2233_v0  ;;  %v2235_v7 = vld [vmem:[%s3024_s4 + $0xc8] sm:$0xff]  }
  0xef   :  { %v295_v13 = vsel %vm224_vm1, %v271_v8, 0.0  ;;  %v2236_v8 = vld [vmem:[%s3024_s4 + $0x18] sm:$0xff]   ;;  %2089 = vmatprep.subr.bf16.mxu1 %v2234_v3  ;;  %2113 = vmatprep.subr.bf16.mxu0 %v2235_v7 }
  0xf0   :  { %v245_v18 = vadd.f32 %v244_v12, %v243_v11  ;;  %v296_v21 = vadd.f32 %v295_v13, %v294_v9  ;;  %v2237_v11 = vld [vmem:[%s3024_s4 + $0x88] sm:$0xff]   ;;  %v2238_v12 = vld [vmem:[%s3024_s4 + $0x60] sm:$0xff]  }
  0xf1   :  { %v2489_v23 = vpop.f32.mrb[12].mxu0  ;;  %2090 = vmatpush3.bf16.msra.mxu1 %v2236_v8 }
  0xf2   :  { %v298_v27 = vadd.f32 %v297_v14, %v296_v21  ;;  %v2496_v28 = vpop.f32.mrb[13].mxu0  ;;  %v247_v29 = vadd.f32 %v246_v15, %v245_v18  ;;  %v276_v37 = vmul.f32 %v2489_v23, %v2489_v23  ;;  %v252_v51 = vsel %vm224_vm1, %v2489_v23, 0.0  ;;  %2114 = vmatpush3.bf16.msra.mxu0 %v2237_v11  ;;  %v2239_v15 = vld [vmem:[%s3024_s4 + $0xd0] sm:$0xff]   ;;  %v2240_v18 = vld [vmem:[%s3024_s4 + $0x20] sm:$0xff]   ;;  %2091 = vmatprep.subr.bf16.mxu1 %v2238_v12 }
  0xf3   :  { %v248_v30 = vsel %vm224_vm1, %v2496_v28, 0.0  ;;  %v274_v31 = vmul.f32 %v2496_v28, %v2496_v28  ;;  %v2502_v32 = vpop.f32.mrb[14].mxu0  ;;  %2115 = vmatprep.subr.bf16.mxu0 %v2239_v15 }
  0xf4   :  { %v249_v38 = vadd.f32 %v248_v30, %v247_v29  ;;  %v300_v39 = vadd.f32 %v299_v26, %v298_v27  ;;  %v2512_v40 = vpop.f32.mrb[15].mxu0  ;;  %v277_v52 = vmul.f32 %v2502_v32, %v2502_v32  ;;  %v305_v54 = vsel %vm224_vm1, %v276_v37, 0.0  ;;  %v2242_v27 = vld [vmem:[%s3024_s4 + $0x68] sm:$0xff]  }
  0xf5   :  { %v301_v43 = vsel %vm224_vm1, %v274_v31, 0.0  ;;  %v250_v45 = vsel %vm224_vm1, %v2512_v40, 0.0  ;;  %v275_v46 = vmul.f32 %v2512_v40, %v2512_v40  ;;  %v254_v59 = vsel %vm224_vm1, %v2502_v32, 0.0  ;;  %v2243_v31 = vld [vmem:[%s3024_s4 + $0xd8] sm:$0xff]   ;;  %2092 = vmatpush3.bf16.msra.mxu1 %v2240_v18 }
  0xf6   :  { %v302_v47 = vadd.f32 %v301_v43, %v300_v39  ;;  %v251_v48 = vadd.f32 %v250_v45, %v249_v38  ;;  %v307_v2 = vsel %vm224_vm1, %v277_v52, 0.0  ;;  %v875_v26 = vrot.slane %v873_v25, 5  ;;  %2116 = vmatpush3.bf16.msra.mxu0 %v2241_v24  ;;  %2093 = vmatprep.subr.bf16.mxu1 %v2242_v27  ;;  %v2245_v39 = vld [vmem:[%s3024_s4 + $0x98] sm:$0xff]   ;;  %v315_v52 = vld [vmem:[%s3025_s2] sm:$0x1] }
  0xf7   :  { %v303_v53 = vsel %vm224_vm1, %v275_v46, 0.0  ;;  %v328_v38 = vlaneseq  ;;  %2117 = vmatprep.subr.bf16.mxu0 %v2243_v31  ;;  %v2246_v31 = vld [vmem:[%s3024_s4 + $0x70] sm:$0xff]  }
  0xf8   :  { %v253_v55 = vadd.f32 %v252_v51, %v251_v48  ;;  %v304_v56 = vadd.f32 %v303_v53, %v302_v47  ;;  %877 = vst.msk [vmem:[#allocation3 + $0x78] sm:$0xf0] %vm549_vm5, %v875_v26 }
  0xf9   :  { %2094 = vmatpush3.bf16.msra.mxu1 %v2244_v33  ;;  %v2581_v47 = vshrl.u32 %v328_v38, 7  ;;  %v2247_v33 = vld [vmem:[%s3024_s4 + $0xe0] sm:$0xff]  }
  0xfa   :  { %v255_v62 = vadd.f32 %v254_v59, %v253_v55  ;;  %v306_v63 = vadd.f32 %v305_v54, %v304_v56  ;;  %2118 = vmatpush3.bf16.msra.mxu0 %v2245_v39  ;;  %v316_v54 = vld [vmem:[%s3026_s3] sm:$0x1]  ;;  %2095 = vmatprep.subr.bf16.mxu1 %v2246_v31 }
  0xfb   :  { %v2584_v50 = vsub.s32 0, %v2581_v47  ;;  %2119 = vmatprep.subr.bf16.mxu0 %v2247_v33 }
  0xfc   :  { %v256_v4 = vrot.slane %v255_v62, 4  ;;  %v308_v6 = vadd.f32 %v307_v2, %v306_v63 }
  0xfe   :  { %v257_v9 = vadd.f32 %v256_v4, %v255_v62  ;;  %v309_v10 = vrot.slane %v308_v6, 4 }
 0x100   :  { %v258_v13 = vrot.slane %v257_v9, 2  ;;  %v310_v14 = vadd.f32 %v309_v10, %v308_v6  ;;  %v612_v6 = vpop.permute.xlu0 %611 }
 0x101   :  { %614 = vst.msk [vmem:[#allocation3 + $0x8] sm:$0xf] %vm564_vm6, %v612_v6 }
 0x102   :  { %v259_v21 = vadd.f32 %v258_v13, %v257_v9  ;;  %v311_v22 = vrot.slane %v310_v14, 2 }
 0x104   :  { %v260_v29 = vrot.slane %v259_v21, 1  ;;  %v312_v30 = vadd.f32 %v311_v22, %v310_v14 }
 0x106   :  { %v261_v35 = vadd.f32 %v260_v29, %v259_v21  ;;  %v313_v37 = vrot.slane %v312_v30, 1 }
 0x108   :  { %v314_v42 = vadd.f32 %v313_v37, %v312_v30  ;;  %v317_v43 = vmul.f32 0.0078125, %v261_v35  ;;  %v2248_v35 = vld [vmem:[%s3024_s4 + $0x30] sm:$0xff]  }
 0x109   :  { %2096 = vmatpush3.bf16.msra.mxu1 %v2248_v35 }
 0x10a   :  { %v318_v45 = vmul.f32 0.0078125, %v314_v42  ;;  %v319_v46 = vmul.f32 %v317_v43, %v317_v43 }
 0x10c   :  { %v320_v48 = vsub.f32 %v318_v45, %v319_v46 }
 0x10e   :  { %v321_v49 = vmax.f32 %v320_v48, 0.0 }
 0x110   :  { %v322_v51 = vadd.f32 1e-05, %v321_v49 }
 0x112   :  { %2292 = vrsqrt.f32 %v322_v51 }
 0x11c   :  { %v2293_v53 = vpop.eup %2292 }
 0x11d   :  { %v324_v55 = vmul.f32 %v2293_v53, %v315_v52 }
 0x11f   :  { %v325_v56 = vmul.f32 %v324_v55, %v317_v43  ;;  %v2593_v57 = vrot.slane %v324_v55, %v2584_v50  ;;  %v2249_v43 = vld [vmem:[%s3024_s4 + $0xa0] sm:$0xff]  }
 0x120   :  { %2120 = vmatpush3.bf16.msra.mxu0 %v2249_v43 }
 0x121   :  { %v326_v59 = vsub.f32 %v316_v54, %v325_v56  ;;  %v346_v61 = vmul.f32 %v2593_v57, %v2512_v40  ;;  %v341_v62 = vmul.f32 %v2593_v57, %v2463_v60  ;;  %v334_v63 = vmul.f32 %v2593_v57, %v2414_v20 }
 0x122   :  { %v333_v0 = vmul.f32 %v2593_v57, %v2408_v17  ;;  %v343_v2 = vmul.f32 %v2461_v58, %v2593_v57  ;;  %v342_v3 = vmul.f32 %v2593_v57, %v2474_v5  ;;  %v336_v4 = vmul.f32 %v2412_v19, %v2593_v57  ;;  %v562_v17 = vpop.permute.xlu1 %561 }
 0x123   :  { %v2610_v40 = vrot.slane %v326_v59, %v2584_v50  ;;  %v335_v60 = vmul.f32 %v2406_v16, %v2593_v57  ;;  %v2616_v20 = vmul.f32 %v2470_v1, %v2593_v57  ;;  %v2620_v58 = vmul.f32 %v2593_v57, %v2496_v28  ;;  %565 = vst.msk [vmem:[#allocation3] sm:$0xf] %vm564_vm6, %v562_v17  ;;  %v2250_v59 = vld [vmem:[%s3024_s4 + $0x78] sm:$0xff]  }
 0x124   :  { %v2626_v19 = vmul.f32 %v2593_v57, %v2444_v44  ;;  %v2630_v16 = vmul.f32 %v2593_v57, %v2435_v36  ;;  %v2634_v1 = vmul.f32 %v2489_v23, %v2593_v57  ;;  %v2638_v5 = vmul.f32 %v2442_v41, %v2593_v57  ;;  %2097 = vmatprep.subr.bf16.mxu1 %v2250_v59 }
 0x125   :  { %v368_v28 = vadd.f32 %v2610_v40, %v346_v61  ;;  %v363_v7 = vadd.f32 %v2610_v40, %v341_v62  ;;  %v356_v8 = vadd.f32 %v2610_v40, %v334_v63  ;;  %v355_v44 = vadd.f32 %v2610_v40, %v333_v0  ;;  %v2251_v61 = vld [vmem:[%s3024_s4 + $0xe8] sm:$0xff]   ;;  %v2252_v62 = vld [vmem:[%s3024_s4 + $0x38] sm:$0xff]  }
 0x126   :  { %v365_v9 = vadd.f32 %v2610_v40, %v343_v2  ;;  %v364_v36 = vadd.f32 %v2610_v40, %v342_v3  ;;  %v358_v10 = vadd.f32 %v2610_v40, %v336_v4  ;;  %v357_v23 = vadd.f32 %v2610_v40, %v335_v60  ;;  %v903_v12 = vpop.permute.xlu1 %902  ;;  %v2253_v4 = vld [vmem:[%s3024_s4 + $0xa8] sm:$0xff]   ;;  %2121 = vmatprep.subr.bf16.mxu0 %v2251_v61 }
 0x127   :  { %vm384_vm9 = vcmp.ge.f32.partialorder %v368_v28, 0.0  ;;  %v400_v11 = vmul.f32 0.2, %v368_v28  ;;  %vm379_vm10 = vcmp.ge.f32.partialorder %v363_v7, 0.0  ;;  %v395_v41 = vmul.f32 0.2, %v363_v7  ;;  %2098 = vmatpush3.bf16.msra.mxu1 %v2252_v62  ;;  %2122 = vmatpush3.bf16.msra.mxu0 %v2253_v4 }
 0x128   :  { %vm372_vm11 = vcmp.ge.f32.partialorder %v356_v8, 0.0  ;;  %v388_v13 = vmul.f32 0.2, %v356_v8  ;;  %vm371_vm12 = vcmp.ge.f32.partialorder %v355_v44, 0.0  ;;  %v387_v14 = vmul.f32 0.2, %v355_v44 }
 0x129   :  { %905 = vst.msk [vmem:[#allocation3 + $0x78] sm:$0xf0] %vm572_vm7, %v903_v12  ;;  %v416_v15 = vsel %vm384_vm9, %v368_v28, %v400_v11  ;;  %v411_v18 = vsel %vm379_vm10, %v363_v7, %v395_v41  ;;  %vm381_vm13 = vcmp.ge.f32.partialorder %v365_v9, 0.0  ;;  %v397_v21 = vmul.f32 0.2, %v365_v9  ;;  %v2255_v7 = vld [vmem:[%s3024_s4 + $0x140] sm:$0xff]  }
 0x12a   :  { %v527_v22 = vpack.c.bf16 %v416_v15, %v416_v15  ;;  %v502_v24 = vpack.c.bf16 %v411_v18, %v411_v18  ;;  %v404_v25 = vsel %vm372_vm11, %v356_v8, %v388_v13  ;;  %v403_v26 = vsel %vm371_vm12, %v355_v44, %v387_v14  ;;  %v2256_v8 = vld [vmem:[%s3024_s4 + $0xb0] sm:$0xff]   ;;  %2139 = vmatprep.subr.bf16.mxu1 %v2255_v7 }
 0x12b   :  { %v467_v27 = vpack.c.bf16 %v404_v25, %v404_v25  ;;  %v461_v29 = vpack.c.bf16 %v403_v26, %v403_v26  ;;  %v413_v30 = vsel %vm381_vm13, %v365_v9, %v397_v21  ;;  %vm380_vm14 = vcmp.ge.f32.partialorder %v364_v36, 0.0 }
 0x12c   :  { %v529_v37 = vrot.slane %v527_v22, 7  ;;  %v504_v38 = vrot.slane %v502_v24, 7  ;;  %v512_v39 = vpack.c.bf16 %v413_v30, %v413_v30  ;;  %v396_v42 = vmul.f32 0.2, %v364_v36 }
 0x12d   :  { %v469_v45 = vrot.slane %v467_v27, 7  ;;  %v463_v46 = vrot.slane %v461_v29, 7  ;;  %vm374_vm15 = vcmp.ge.f32.partialorder %v358_v10, 0.0  ;;  %v390_v48 = vmul.f32 0.2, %v358_v10 }
 0x12e   :  { %531 = vst.msk [vmem:[#allocation2 + $0xd0] sm:$0x1e] %vm465_vm8, %v529_v37  ;;  %506 = vst.msk [vmem:[#allocation2 + $0x88] sm:$0x1e] %vm465_vm8, %v504_v38  ;;  %v514_v49 = vrot.slane %v512_v39, 7  ;;  %v412_v51 = vsel %vm380_vm14, %v364_v36, %v396_v42  ;;  %vm373_vm0 = vcmp.ge.f32.partialorder %v357_v23, 0.0  ;;  %v366_v55 = vadd.f32 %v2610_v40, %v2616_v20 }
 0x12f   :  { %v389_v52 = vmul.f32 0.2, %v357_v23  ;;  %471 = vst.msk [vmem:[#allocation2 + $0x10] sm:$0x1e] %vm465_vm8, %v469_v45  ;;  %466 = vst.msk [vmem:[#allocation2 + $0x8] sm:$0x1e] %vm465_vm8, %v463_v46  ;;  %v507_v53 = vpack.c.bf16 %v412_v51, %v412_v51  ;;  %v406_v54 = vsel %vm374_vm15, %v358_v10, %v390_v48  ;;  %v367_v56 = vadd.f32 %v2610_v40, %v2620_v58 }
 0x130   :  { %516 = vst.msk [vmem:[#allocation2 + $0x98] sm:$0x1e] %vm465_vm8, %v514_v49  ;;  %v477_v63 = vpack.c.bf16 %v406_v54, %v406_v54  ;;  %v360_v2 = vadd.f32 %v2610_v40, %v2626_v19  ;;  %v359_v3 = vadd.f32 %v2610_v40, %v2630_v16  ;;  %vm382_vm1 = vcmp.ge.f32.partialorder %v366_v55, 0.0  ;;  %v2254_v16 = vld [vmem:[%s3024_s4 + $0xf0] sm:$0xff]   ;;  %v2258_v54 = vld [vmem:[%s3024_s4 + $0xf8] sm:$0xff]  }
 0x131   :  { %v405_v0 = vsel %vm373_vm0, %v357_v23, %v389_v52  ;;  %v509_v60 = vrot.slane %v507_v53, 7  ;;  %v398_v17 = vmul.f32 0.2, %v366_v55  ;;  %v399_v58 = vmul.f32 0.2, %v367_v56  ;;  %2123 = vmatprep.subr.bf16.mxu0 %v2254_v16 }
 0x132   :  { %v472_v20 = vpack.c.bf16 %v405_v0, %v405_v0  ;;  %v479_v6 = vrot.slane %v477_v63, 7  ;;  %vm383_vm2 = vcmp.ge.f32.partialorder %v367_v56, 0.0  ;;  %v2700_v44 = vadd.f32 %v2610_v40, %v2634_v1  ;;  %2124 = vmatpush3.bf16.msra.mxu0 %v2256_v8  ;;  %v2263_v0 = vld [vmem:[%s3024_s4 + $0x1c0] sm:$0xff]  }
 0x133   :  { %511 = vst.msk [vmem:[#allocation2 + $0x90] sm:$0x1e] %vm465_vm8, %v509_v60  ;;  %v414_v28 = vsel %vm382_vm1, %v366_v55, %v398_v17  ;;  %v2705_v23 = vadd.f32 %v2610_v40, %v2638_v5  ;;  %v415_v12 = vsel %vm383_vm2, %v367_v56, %v399_v58  ;;  %v339_v1 = vmul.f32 %v2433_v34, %v2593_v57  ;;  %v2260_v56 = vld [vmem:[%s3024_s4 + $0xb8] sm:$0xff]  }
 0x134   :  { %v474_v19 = vrot.slane %v472_v20, 7  ;;  %481 = vst.msk [vmem:[#allocation2 + $0x20] sm:$0x1e] %vm465_vm8, %v479_v6  ;;  %v517_v10 = vpack.c.bf16 %v414_v28, %v414_v28  ;;  %v392_v15 = vmul.f32 0.2, %v360_v2  ;;  %v348_v21 = vmul.f32 %v2502_v32, %v2593_v57  ;;  %2125 = vmatprep.subr.bf16.mxu0 %v2258_v54 }
 0x135   :  { %v615_v9 = vld [vmem:[#allocation2 + $0x88] sm:$0x3c]  ;;  %v391_v18 = vmul.f32 0.2, %v359_v3  ;;  %v522_v22 = vpack.c.bf16 %v415_v12, %v415_v12  ;;  %vm376_vm3 = vcmp.ge.f32.partialorder %v360_v2, 0.0  ;;  %vm375_vm9 = vcmp.ge.f32.partialorder %v359_v3, 0.0 }
 0x136   :  { %v566_v36 = vld [vmem:[#allocation2 + $0x88] sm:$0x1e]  ;;  %476 = vst.msk [vmem:[#allocation2 + $0x18] sm:$0x1e] %vm465_vm8, %v474_v19  ;;  %v617_v11 = vrot.slane %v615_v9, 6  ;;  %v519_v5 = vrot.slane %v517_v10, 7  ;;  %v2714_v26 = vadd.f32 %v2610_v40, %v339_v1  ;;  %v2717_v34 = vadd.f32 %v2610_v40, %v348_v21  ;;  %2126 = vmatpush3.bf16.msra.mxu0 %v2260_v56 }
 0x137   :  { %v568_v41 = vrot.slane %v566_v36, 5  ;;  %v705_v13 = vld [vmem:[#allocation2 + $0x10] sm:$0x3c]  ;;  %v698_v14 = vld [vmem:[#allocation2 + $0x8] sm:$0x3c]  ;;  %v408_v32 = vsel %vm376_vm3, %v360_v2, %v392_v15  ;;  %v407_v57 = vsel %vm375_vm9, %v359_v3, %v391_v18  ;;  %v524_v33 = vrot.slane %v522_v22, 7  ;;  %2167 = vmatprep.subr.bf16.mxu0 %v2263_v0 }
 0x138   :  { %618 = vrot.lane.b32.xlu0 %v617_v11, %s2301_s0  ;;  %v707_v24 = vrot.slane %v705_v13, 6  ;;  %v700_v25 = vrot.slane %v698_v14, 2  ;;  %v657_v27 = vld [vmem:[#allocation2 + $0x10] sm:$0x1e]  ;;  %v650_v29 = vld [vmem:[#allocation2 + $0x8] sm:$0x1e]  ;;  %v487_v38 = vpack.c.bf16 %v408_v32, %v408_v32  ;;  %v482_v39 = vpack.c.bf16 %v407_v57, %v407_v57 }
 0x139   :  { %569 = vrot.lane.b32.xlu1 %v568_v41, %s2301_s0  ;;  %521 = vst.msk [vmem:[#allocation2 + $0xa0] sm:$0x1e] %vm465_vm8, %v519_v5  ;;  %v659_v30 = vrot.slane %v657_v27, 5  ;;  %v652_v31 = vrot.slane %v650_v29, 1  ;;  %v629_v35 = vld [vmem:[#allocation2 + $0x98] sm:$0x3c] }
 0x13a   :  { %v622_v37 = vld [vmem:[#allocation2 + $0x90] sm:$0x3c]  ;;  %526 = vst.msk [vmem:[#allocation2 + $0xc8] sm:$0x1e] %vm465_vm8, %v524_v33  ;;  %v581_v40 = vld [vmem:[#allocation2 + $0x98] sm:$0x1e] }
 0x13b   :  { %v631_v42 = vrot.slane %v629_v35, 6  ;;  %v624_v43 = vrot.slane %v622_v37, 2  ;;  %v574_v45 = vld [vmem:[#allocation2 + $0x90] sm:$0x1e]  ;;  %v489_v46 = vrot.slane %v487_v38, 7  ;;  %v484_v48 = vrot.slane %v482_v39, 7 }
 0x13c   :  { %701 = vrot.lane.b32.xlu0 %v700_v25, %s2301_s0  ;;  %v598_v49 = vld [vmem:[#allocation2 + $0xd0] sm:$0x1e]  ;;  %v583_v51 = vrot.slane %v581_v40, 5  ;;  %vm385_vm10 = vcmp.ge.f32.partialorder %v2700_v44, 0.0  ;;  %v401_v52 = vmul.f32 0.2, %v2700_v44 }
 0x13d   :  { %708 = vrot.lane.b32.xlu1 %v707_v24, %s2301_s0  ;;  %v600_v53 = vrot.slane %v598_v49, 1  ;;  %v719_v55 = vld [vmem:[#allocation2 + $0x20] sm:$0x3c]  ;;  %491 = vst.msk [vmem:[#allocation2 + $0x50] sm:$0x1e] %vm465_vm8, %v489_v46  ;;  %vm378_vm11 = vcmp.ge.f32.partialorder %v2705_v23, 0.0 }
 0x13e   :  { %486 = vst.msk [vmem:[#allocation2 + $0x48] sm:$0x1e] %vm465_vm8, %v484_v48  ;;  %v551_v59 = vld [vmem:[#allocation2 + $0xd0] sm:$0xf]  ;;  %v576_v61 = vrot.slane %v574_v45, 1  ;;  %v417_v63 = vsel %vm385_vm10, %v2700_v44, %v401_v52  ;;  %vm377_vm12 = vcmp.ge.f32.partialorder %v2714_v26, 0.0 }
 0x13f   :  { %v712_v62 = vld [vmem:[#allocation2 + $0x18] sm:$0x3c]  ;;  %602 = vst.msk [vmem:[#allocation3 + $0x48] sm:$0xf] %vm543_vm4, %v600_v53  ;;  %552 = vst.msk [vmem:[#allocation3 + $0x40] sm:$0xf] %vm543_vm4, %v551_v59  ;;  %v532_v60 = vpack.c.bf16 %v417_v63, %v417_v63 }
 0x140   :  { %653 = vrot.lane.b32.xlu0 %v652_v31, %s2301_s0  ;;  %v394_v2 = vmul.f32 0.2, %v2705_v23  ;;  %vm386_vm13 = vcmp.ge.f32.partialorder %v2717_v34, 0.0  ;;  %v671_v20 = vld [vmem:[#allocation2 + $0x20] sm:$0x1e]  ;;  %v721_v8 = vrot.slane %v719_v55, 6 }
 0x141   :  { %660 = vrot.lane.b32.xlu1 %v659_v30, %s2301_s0  ;;  %v593_v3 = vld [vmem:[#allocation2 + $0xc8] sm:$0x1e]  ;;  %v393_v19 = vmul.f32 0.2, %v2714_v26  ;;  %v534_v28 = vrot.slane %v532_v60, 7  ;;  %v714_v44 = vrot.slane %v712_v62, 2 }
 0x142   :  { %v545_v4 = vld [vmem:[#allocation2 + $0xc8] sm:$0xf]  ;;  %v595_v17 = vrot.slane %v593_v3, 5  ;;  %v410_v58 = vsel %vm378_vm11, %v2705_v23, %v394_v2  ;;  %v402_v7 = vmul.f32 0.2, %v2717_v34  ;;  %v673_v10 = vrot.slane %v671_v20, 5 }
 0x143   :  { %v547_v6 = vrot.slane %v545_v4, 4  ;;  %v497_v16 = vpack.c.bf16 %v410_v58, %v410_v58  ;;  %v664_v9 = vld [vmem:[#allocation2 + $0x18] sm:$0x1e]  ;;  %v409_v36 = vsel %vm377_vm12, %v2714_v26, %v393_v19  ;;  %536 = vst.msk [vmem:[#allocation2 + $0xd8] sm:$0x1e] %vm465_vm8, %v534_v28  ;;  %vm1982_vm14 = vcmask 1024  }
 0x144   :  { %625 = vrot.lane.b32.xlu0 %v624_v43, %s2301_s0  ;;  %597 = vst.msk [vmem:[#allocation3 + $0x8] sm:$0xf0] %vm549_vm5, %v595_v17  ;;  %v492_v11 = vpack.c.bf16 %v409_v36, %v409_v36  ;;  %v773_v41 = vld [vmem:[#allocation2 + $0xd0] sm:$0x1e]  ;;  %v768_v12 = vld [vmem:[#allocation2 + $0xc8] sm:$0x1e]  ;;  %v418_v13 = vsel %vm386_vm13, %v2717_v34, %v402_v7 }
 0x145   :  { %632 = vrot.lane.b32.xlu1 %v631_v42, %s2301_s0  ;;  %550 = vst.msk [vmem:[#allocation3] sm:$0xf0] %vm549_vm5, %v547_v6  ;;  %v499_v23 = vrot.slane %v497_v16, 7  ;;  %v683_v14 = vld [vmem:[#allocation2 + $0x50] sm:$0x1e]  ;;  %v537_v18 = vpack.c.bf16 %v418_v13, %v418_v13  ;;  %v666_v26 = vrot.slane %v664_v9, 1 }
 0x146   :  { %v678_v1 = vld [vmem:[#allocation2 + $0x48] sm:$0x1e]  ;;  %v638_v15 = vld [vmem:[#allocation2 + $0x50] sm:$0xf]  ;;  %v685_v21 = vrot.slane %v683_v14, 5  ;;  %v494_v25 = vrot.slane %v492_v11, 7 }
 0x147   :  { %v680_v5 = vrot.slane %v678_v1, 1  ;;  %v640_v22 = vrot.slane %v638_v15, 4  ;;  %v636_v24 = vld [vmem:[#allocation2 + $0x48] sm:$0xf]  ;;  %501 = vst.msk [vmem:[#allocation2 + $0x60] sm:$0x1e] %vm465_vm8, %v499_v23 }
 0x148   :  { %577 = vrot.lane.b32.xlu0 %v576_v61, %s2301_s0  ;;  %v788_v27 = vld [vmem:[#allocation2 + $0x88] sm:$0x3c]  ;;  %637 = vst.msk [vmem:[#allocation3 + $0x10] sm:$0xf] %vm543_vm4, %v636_v24  ;;  %v775_v34 = vrot.slane %v773_v41, 5  ;;  %v770_v29 = vrot.slane %v768_v12, 1 }
 0x149   :  { %584 = vrot.lane.b32.xlu1 %v583_v51, %s2301_s0  ;;  %v539_v32 = vrot.slane %v537_v18, 7  ;;  %v795_v57 = vld [vmem:[#allocation2 + $0x90] sm:$0x3c]  ;;  %687 = vst.msk [vmem:[#allocation3 + $0x18] sm:$0xf0] %vm549_vm5, %v685_v21  ;;  %v790_v42 = vrot.slane %v788_v27, 2 }
 0x14a   :  { %682 = vst.msk [vmem:[#allocation3 + $0x18] sm:$0xf] %vm543_vm4, %v680_v5  ;;  %v728_v30 = vld [vmem:[#allocation2 + $0xd0] sm:$0xf]  ;;  %v726_v31 = vld [vmem:[#allocation2 + $0xc8] sm:$0xf] }
 0x14b   :  { %642 = vst.msk [vmem:[#allocation3 + $0x10] sm:$0xf0] %vm549_vm5, %v640_v22  ;;  %777 = vst.msk [vmem:[#allocation3 + $0x28] sm:$0xf0] %vm549_vm5, %v775_v34  ;;  %v730_v33 = vrot.slane %v728_v30, 4  ;;  %v797_v40 = vrot.slane %v795_v57, 6 }
 0x14c   :  { %715 = vrot.lane.b32.xlu0 %v714_v44, %s2301_s0  ;;  %496 = vst.msk [vmem:[#allocation2 + $0x58] sm:$0x1e] %vm465_vm8, %v494_v25  ;;  %v858_v35 = vld [vmem:[#allocation2 + $0x50] sm:$0x1e]  ;;  %541 = vst.msk [vmem:[#allocation2 + $0xe0] sm:$0x1e] %vm465_vm8, %v539_v32 }
 0x14d   :  { %722 = vrot.lane.b32.xlu1 %v721_v8, %s2301_s0  ;;  %772 = vst.msk [vmem:[#allocation3 + $0x28] sm:$0xf] %vm543_vm4, %v770_v29  ;;  %727 = vst.msk [vmem:[#allocation3 + $0x20] sm:$0xf] %vm543_vm4, %v726_v31  ;;  %v747_v37 = vld [vmem:[#allocation2 + $0x90] sm:$0x1e] }
 0x14e   :  { %v740_v38 = vld [vmem:[#allocation2 + $0x88] sm:$0x1e]  ;;  %v860_v39 = vrot.slane %v858_v35, 1  ;;  %v603_v43 = vld [vmem:[#allocation2 + $0xd8] sm:$0x1e]  ;;  %v749_v51 = vrot.slane %v747_v37, 5 }
 0x14f   :  { %v553_v45 = vld [vmem:[#allocation2 + $0xd8] sm:$0xf]  ;;  %732 = vst.msk [vmem:[#allocation3 + $0x20] sm:$0xf0] %vm549_vm5, %v730_v33  ;;  %v605_v46 = vrot.slane %v603_v43, 5  ;;  %v742_v52 = vrot.slane %v740_v38, 1 }
 0x150   :  { %667 = vrot.lane.b32.xlu0 %v666_v26, %s2301_s0  ;;  %v555_v48 = vrot.slane %v553_v45, 4  ;;  %862 = vst.msk [vmem:[#allocation3 + $0x38] sm:$0xf] %vm543_vm4, %v860_v39  ;;  %v816_v49 = vld [vmem:[#allocation2 + $0x50] sm:$0xf]  ;;  %v2257_v35 = vld [vmem:[%s3024_s4 + $0x100] sm:$0xff]  }
 0x151   :  { %674 = vrot.lane.b32.xlu1 %v673_v10, %s2301_s0  ;;  %v693_v53 = vld [vmem:[#allocation2 + $0x60] sm:$0x1e]  ;;  %817 = vst.msk [vmem:[#allocation3 + $0x30] sm:$0xf] %vm543_vm4, %v816_v49  ;;  %v885_v55 = vld [vmem:[#allocation2 + $0x18] sm:$0x3c] }
 0x152   :  { %v645_v54 = vld [vmem:[#allocation2 + $0x60] sm:$0xf]  ;;  %v878_v56 = vld [vmem:[#allocation2 + $0x10] sm:$0x3c]  ;;  %607 = vst.msk [vmem:[#allocation3 + $0x48] sm:$0xf0] %vm549_vm5, %v605_v46 }
 0x153   :  { %557 = vst.msk [vmem:[#allocation3 + $0x40] sm:$0xf0] %vm549_vm5, %v555_v48  ;;  %v695_v59 = vrot.slane %v693_v53, 5  ;;  %v647_v61 = vrot.slane %v645_v54, 4  ;;  %v778_v62 = vld [vmem:[#allocation2 + $0xd8] sm:$0x1e] }
 0x154   :  { %791 = vrot.lane.b32.xlu0 %v790_v42, %s2301_s0  ;;  %v688_v63 = vld [vmem:[#allocation2 + $0x58] sm:$0x1e]  ;;  %v783_v20 = vld [vmem:[#allocation2 + $0xe0] sm:$0x1e]  ;;  %v780_v58 = vrot.slane %v778_v62, 1  ;;  %v887_v7 = vrot.slane %v885_v55, 6 }
 0x155   :  { %798 = vrot.lane.b32.xlu1 %v797_v40, %s2301_s0  ;;  %v643_v0 = vld [vmem:[#allocation2 + $0x58] sm:$0xf]  ;;  %697 = vst.msk [vmem:[#allocation3 + $0x58] sm:$0xf0] %vm549_vm5, %v695_v59  ;;  %v690_v3 = vrot.slane %v688_v63, 1  ;;  %v785_v6 = vrot.slane %v783_v20, 5 }
 0x156   :  { %v863_v2 = vld [vmem:[#allocation2 + $0x58] sm:$0x1e]  ;;  %649 = vst.msk [vmem:[#allocation3 + $0x50] sm:$0xf0] %vm549_vm5, %v647_v61  ;;  %v735_v19 = vld [vmem:[#allocation2 + $0xe0] sm:$0xf] }
 0x157   :  { %644 = vst.msk [vmem:[#allocation3 + $0x50] sm:$0xf] %vm543_vm4, %v643_v0  ;;  %v865_v4 = vrot.slane %v863_v2, 5  ;;  %v818_v60 = vld [vmem:[#allocation2 + $0x58] sm:$0xf]  ;;  %v880_v8 = vrot.slane %v878_v56, 2 }
 0x158   :  { %743 = vrot.lane.b32.xlu0 %v742_v52, %s2301_s0  ;;  %v820_v17 = vrot.slane %v818_v60, 4  ;;  %692 = vst.msk [vmem:[#allocation3 + $0x58] sm:$0xf] %vm543_vm4, %v690_v3  ;;  %v733_v28 = vld [vmem:[#allocation2 + $0xd8] sm:$0xf]  ;;  %v737_v44 = vrot.slane %v735_v19, 4 }
 0x159   :  { %750 = vrot.lane.b32.xlu1 %v749_v51, %s2301_s0  ;;  %867 = vst.msk [vmem:[#allocation3 + $0x38] sm:$0xf0] %vm549_vm5, %v865_v4  ;;  %v868_v16 = vld [vmem:[#allocation2 + $0x60] sm:$0x1e]  ;;  %787 = vst.msk [vmem:[#allocation3 + $0x68] sm:$0xf0] %vm549_vm5, %v785_v6 }
 0x15a   :  { %822 = vst.msk [vmem:[#allocation3 + $0x30] sm:$0xf0] %vm549_vm5, %v820_v17  ;;  %v870_v9 = vrot.slane %v868_v16, 1  ;;  %v823_v36 = vld [vmem:[#allocation2 + $0x60] sm:$0xf]  ;;  %v2259_v42 = vld [vmem:[%s3024_s4 + $0x148] sm:$0xff]  }
 0x15b   :  { %782 = vst.msk [vmem:[#allocation3 + $0x68] sm:$0xf] %vm543_vm4, %v780_v58  ;;  %734 = vst.msk [vmem:[#allocation3 + $0x60] sm:$0xf] %vm543_vm4, %v733_v28  ;;  %v837_v10 = vld [vmem:[#allocation2 + $0x18] sm:$0x1e] }
 0x15c   :  { %v830_v23 = vld [vmem:[#allocation2 + $0x10] sm:$0x1e]  ;;  %824 = vst.msk [vmem:[#allocation3 + $0x70] sm:$0xf] %vm543_vm4, %v823_v36  ;;  %881 = vrot.lane.b32.xlu0 %v880_v8, %s2301_s0  ;;  %872 = vst.msk [vmem:[#allocation3 + $0x78] sm:$0xf] %vm543_vm4, %v870_v9 }
 0x15d   :  { %888 = vrot.lane.b32.xlu1 %v887_v7, %s2301_s0  ;;  %739 = vst.msk [vmem:[#allocation3 + $0x60] sm:$0xf0] %vm549_vm5, %v737_v44  ;;  %v839_v11 = vrot.slane %v837_v10, 5  ;;  %v832_v41 = vrot.slane %v830_v23, 1  ;;  %v809_v12 = vld [vmem:[#allocation2 + $0xa0] sm:$0x3c] }
 0x15e   :  { %v802_v13 = vld [vmem:[#allocation2 + $0x98] sm:$0x3c]  ;;  %v825_v14 = vld [vmem:[#allocation2 + $0x68] sm:$0xf]  ;;  %v811_v15 = vrot.slane %v809_v12, 6  ;;  %v2262_v49 = vld [vmem:[%s3024_s4 + $0x150] sm:$0xff]  }
 0x15f   :  { %v827_v1 = vrot.slane %v825_v14, 4  ;;  %v804_v18 = vrot.slane %v802_v13, 2  ;;  %v761_v21 = vld [vmem:[#allocation2 + $0xa0] sm:$0x1e]  ;;  %v754_v5 = vld [vmem:[#allocation2 + $0x98] sm:$0x1e] }
 0x160   :  { %833 = vrot.lane.b32.xlu0 %v832_v41, %s2301_s0  ;;  %v851_v22 = vld [vmem:[#allocation2 + $0x28] sm:$0x1e]  ;;  %v763_v24 = vrot.slane %v761_v21, 5  ;;  %v756_v25 = vrot.slane %v754_v5, 1  ;;  %v892_v26 = vld [vmem:[#allocation2 + $0x20] sm:$0x3c] }
 0x161   :  { %840 = vrot.lane.b32.xlu1 %v839_v11, %s2301_s0  ;;  %829 = vst.msk [vmem:[#allocation3 + $0x70] sm:$0xf0] %vm549_vm5, %v827_v1  ;;  %v853_v27 = vrot.slane %v851_v22, 5  ;;  %v894_v34 = vrot.slane %v892_v26, 2  ;;  %v844_v29 = vld [vmem:[#allocation2 + $0x20] sm:$0x1e] }
 0x162   :  { %v846_v32 = vrot.slane %v844_v29, 1  ;;  %v2261_v43 = vld [vmem:[%s3024_s4 + $0x108] sm:$0xff]   ;;  %v2265_v51 = vld [vmem:[%s3024_s4 + $0x180] sm:$0xff]   ;;  %v2264_v52 = vld [vmem:[%s3024_s4 + $0x110] sm:$0xff]   ;;  %vm1970_vm4 = vcmask 238592  }
 0x163   :  { %v2267_v53 = vld [vmem:[%s3024_s4 + $0x1c8] sm:$0xff]   ;;  %v2266_v59 = vld [vmem:[%s3024_s4 + $0x158] sm:$0xff]   ;;  %v2271_v63 = vld [vmem:[%s3024_s4 + $0x1d0] sm:$0xff]  }
 0x164   :  { %805 = vrot.lane.b32.xlu0 %v804_v18, %s2301_s0  ;;  %v2269_v61 = vld [vmem:[%s3024_s4 + $0x188] sm:$0xff]   ;;  %v2268_v62 = vld [vmem:[%s3024_s4 + $0x118] sm:$0xff]   ;;  %v2270_v4 = vld [vmem:[%s3024_s4 + $0x160] sm:$0xff]  }
 0x165   :  { %812 = vrot.lane.b32.xlu1 %v811_v15, %s2301_s0  ;;  %v2273_v60 = vld [vmem:[%s3024_s4 + $0x190] sm:$0xff]   ;;  %v2272_v20 = vld [vmem:[%s3024_s4 + $0x120] sm:$0xff]   ;;  %v2275_v17 = vld [vmem:[%s3024_s4 + $0x1d8] sm:$0xff]  }
 0x166   :  { %v2274_v28 = vld [vmem:[%s3024_s4 + $0x168] sm:$0xff]   ;;  %v2277_v16 = vld [vmem:[%s3024_s4 + $0x198] sm:$0xff]   ;;  %v2279_v8 = vld [vmem:[%s3024_s4 + $0x1e0] sm:$0xff]  }
 0x167   :  { %v2276_v7 = vld [vmem:[%s3024_s4 + $0x128] sm:$0xff]   ;;  %v2278_v10 = vld [vmem:[%s3024_s4 + $0x170] sm:$0xff]   ;;  %v2281_v23 = vld [vmem:[%s3024_s4 + $0x1a0] sm:$0xff]  }
 0x168   :  { %757 = vrot.lane.b32.xlu0 %v756_v25, %s2301_s0  ;;  %v2280_v11 = vld [vmem:[%s3024_s4 + $0x130] sm:$0xff]   ;;  %v2283_v41 = vld [vmem:[%s3024_s4 + $0x1e8] sm:$0xff]   ;;  %v2282_v1 = vld [vmem:[%s3024_s4 + $0x178] sm:$0xff]  }
 0x169   :  { %764 = vrot.lane.b32.xlu1 %v763_v24, %s2301_s0  ;;  %v2285_v15 = vld [vmem:[%s3024_s4 + $0x1a8] sm:$0xff]   ;;  %v2284_v18 = vld [vmem:[%s3024_s4 + $0x138] sm:$0xff]   ;;  %v2286_v21 = vld [vmem:[%s3024_s4 + $0x1f0] sm:$0xff]  }
 0x16a   :  { %v2287_v25 = vld [vmem:[%s3024_s4 + $0x1b0] sm:$0xff]   ;;  %v2288_v26 = vld [vmem:[%s3024_s4 + $0x1f8] sm:$0xff]  }
 0x16c   :  { %895 = vrot.lane.b32.xlu0 %v894_v34, %s2301_s0 }
 0x16d   :  { %854 = vrot.lane.b32.xlu1 %v853_v27, %s2301_s0 }
 0x170   :  { %847 = vrot.lane.b32.xlu0 %v846_v32, %s2301_s0  ;;  %v2289_v32 = vld [vmem:[%s3024_s4 + $0x1b8] sm:$0xff]  }
 0x1aa   :  { %v619_v57 = vpop.permute.xlu0 %618 }
 0x1ab   :  { %v570_v30 = vpop.permute.xlu1 %569  ;;  %621 = vst.msk [vmem:[#allocation3 + $0x8] sm:$0xf0] %vm572_vm7, %v619_v57 }
 0x1ac   :  { %573 = vst.msk [vmem:[#allocation3] sm:$0xf0] %vm572_vm7, %v570_v30 }
 0x1ae   :  { %v702_v33 = vpop.permute.xlu0 %701 }
 0x1af   :  { %v709_v31 = vpop.permute.xlu1 %708  ;;  %704 = vst.msk [vmem:[#allocation3 + $0x18] sm:$0xf] %vm564_vm6, %v702_v33 }
 0x1b0   :  { %711 = vst.msk [vmem:[#allocation3 + $0x18] sm:$0xf0] %vm572_vm7, %v709_v31 }
 0x1b2   :  { %v654_v38 = vpop.permute.xlu0 %653  ;;  %v907_v39 = vld [vmem:[#allocation3 + $0x8] sm:$0xff] }
 0x1b3   :  { %v661_v37 = vpop.permute.xlu1 %660  ;;  %v906_v40 = vld [vmem:[#allocation3] sm:$0xff]  ;;  %656 = vst.msk [vmem:[#allocation3 + $0x10] sm:$0xf] %vm564_vm6, %v654_v38  ;;  %1466 = vmatprep.mubr.bf16.mxu1 %v907_v39 }
 0x1b4   :  { %663 = vst.msk [vmem:[#allocation3 + $0x10] sm:$0xf0] %vm572_vm7, %v661_v37  ;;  %1467 = vmatmul.mubr.bf16.vlgmr.msra.gmra.mrb[0].mxu1 %v906_v40 }
 0x1b5   :  { %2140 = vmatpush3.bf16.msra.mxu1 %v2257_v35 }
 0x1b6   :  { %v626_v46 = vpop.permute.xlu0 %625  ;;  %2141 = vmatprep.subr.bf16.mxu1 %v2259_v42 }
 0x1b7   :  { %v633_v45 = vpop.permute.xlu1 %632  ;;  %v909_v48 = vld [vmem:[#allocation3 + $0x18] sm:$0xff]  ;;  %628 = vst.msk [vmem:[#allocation3 + $0x48] sm:$0xf] %vm564_vm6, %v626_v46 }
 0x1b8   :  { %635 = vst.msk [vmem:[#allocation3 + $0x48] sm:$0xf0] %vm572_vm7, %v633_v45  ;;  %1515 = vmatprep.mubr.bf16.mxu0 %v909_v48 }
 0x1b9   :  { %2142 = vmatpush3.bf16.msra.mxu1 %v2261_v43 }
 0x1ba   :  { %v578_v55 = vpop.permute.xlu0 %577  ;;  %2143 = vmatprep.subr.bf16.mxu1 %v2262_v49 }
 0x1bb   :  { %v585_v54 = vpop.permute.xlu1 %584  ;;  %v908_v56 = vld [vmem:[#allocation3 + $0x10] sm:$0xff]  ;;  %580 = vst.msk [vmem:[#allocation3 + $0x40] sm:$0xf] %vm564_vm6, %v578_v55 }
 0x1bc   :  { %587 = vst.msk [vmem:[#allocation3 + $0x40] sm:$0xf0] %vm572_vm7, %v585_v54  ;;  %1516 = vmatmul.mubr.bf16.vlgmr.msra.gmra.mrb[16].mxu0 %v908_v56 }
 0x1bd   :  { %2168 = vmatpush3.bf16.msra.mxu0 %v2265_v51  ;;  %2144 = vmatpush3.bf16.msra.mxu1 %v2264_v52 }
 0x1be   :  { %2169 = vmatprep.subr.bf16.mxu0 %v2267_v53  ;;  %v716_v2 = vpop.permute.xlu0 %715  ;;  %2145 = vmatprep.subr.bf16.mxu1 %v2266_v59 }
 0x1bf   :  { %v723_v0 = vpop.permute.xlu1 %722  ;;  %v915_v3 = vld [vmem:[#allocation3 + $0x48] sm:$0xff]  ;;  %718 = vst.msk [vmem:[#allocation3 + $0x58] sm:$0xf] %vm564_vm6, %v716_v2 }
 0x1c0   :  { %725 = vst.msk [vmem:[#allocation3 + $0x58] sm:$0xf0] %vm572_vm7, %v723_v0  ;;  %1474 = vmatprep.mubr.bf16.mxu1 %v915_v3 }
 0x1c1   :  { %2170 = vmatpush3.bf16.msra.mxu0 %v2269_v61  ;;  %2146 = vmatpush3.bf16.msra.mxu1 %v2268_v62 }
 0x1c2   :  { %2171 = vmatprep.subr.bf16.mxu0 %v2271_v63  ;;  %v668_v58 = vpop.permute.xlu0 %667  ;;  %2147 = vmatprep.subr.bf16.mxu1 %v2270_v4 }
 0x1c3   :  { %v675_v6 = vpop.permute.xlu1 %674  ;;  %v914_v19 = vld [vmem:[#allocation3 + $0x40] sm:$0xff]  ;;  %670 = vst.msk [vmem:[#allocation3 + $0x50] sm:$0xf] %vm564_vm6, %v668_v58 }
 0x1c4   :  { %677 = vst.msk [vmem:[#allocation3 + $0x50] sm:$0xf0] %vm572_vm7, %v675_v6  ;;  %1475 = vmatmul.mubr.bf16.gmra.mrb[4].mxu1 %v914_v19 }
 0x1c5   :  { %2172 = vmatpush3.bf16.msra.mxu0 %v2273_v60  ;;  %2148 = vmatpush3.bf16.msra.mxu1 %v2272_v20 }
 0x1c6   :  { %2173 = vmatprep.subr.bf16.mxu0 %v2275_v17  ;;  %v792_v9 = vpop.permute.xlu0 %791  ;;  %2149 = vmatprep.subr.bf16.mxu1 %v2274_v28 }
 0x1c7   :  { %v799_v44 = vpop.permute.xlu1 %798  ;;  %v917_v36 = vld [vmem:[#allocation3 + $0x58] sm:$0xff]  ;;  %794 = vst.msk [vmem:[#allocation3 + $0x28] sm:$0xf] %vm564_vm6, %v792_v9 }
 0x1c8   :  { %801 = vst.msk [vmem:[#allocation3 + $0x28] sm:$0xf0] %vm572_vm7, %v799_v44  ;;  %1523 = vmatprep.mubr.bf16.mxu0 %v917_v36 }
 0x1c9   :  { %2174 = vmatpush3.bf16.msra.mxu0 %v2277_v16  ;;  %2150 = vmatpush3.bf16.msra.mxu1 %v2276_v7 }
 0x1ca   :  { %2175 = vmatprep.subr.bf16.mxu0 %v2279_v8  ;;  %v744_v13 = vpop.permute.xlu0 %743  ;;  %2151 = vmatprep.subr.bf16.mxu1 %v2278_v10 }
 0x1cb   :  { %v751_v12 = vpop.permute.xlu1 %750  ;;  %v916_v14 = vld [vmem:[#allocation3 + $0x50] sm:$0xff]  ;;  %746 = vst.msk [vmem:[#allocation3 + $0x20] sm:$0xf] %vm564_vm6, %v744_v13 }
 0x1cc   :  { %753 = vst.msk [vmem:[#allocation3 + $0x20] sm:$0xf0] %vm572_vm7, %v751_v12  ;;  %1524 = vmatmul.mubr.bf16.gmra.mrb[20].mxu0 %v916_v14 }
 0x1cd   :  { %2176 = vmatpush3.bf16.msra.mxu0 %v2281_v23  ;;  %2152 = vmatpush3.bf16.msra.mxu1 %v2280_v11 }
 0x1ce   :  { %2177 = vmatprep.subr.bf16.mxu0 %v2283_v41  ;;  %v882_v22 = vpop.permute.xlu0 %881  ;;  %2153 = vmatprep.subr.bf16.mxu1 %v2282_v1 }
 0x1cf   :  { %v889_v5 = vpop.permute.xlu1 %888  ;;  %v911_v24 = vld [vmem:[#allocation3 + $0x28] sm:$0xff]  ;;  %884 = vst.msk [vmem:[#allocation3 + $0x38] sm:$0xf] %vm564_vm6, %v882_v22 }
 0x1d0   :  { %891 = vst.msk [vmem:[#allocation3 + $0x38] sm:$0xf0] %vm572_vm7, %v889_v5  ;;  %1564 = vmatprep.mubr.bf16.mxu1 %v911_v24 }
 0x1d1   :  { %2178 = vmatpush3.bf16.msra.mxu0 %v2285_v15  ;;  %2154 = vmatpush3.bf16.msra.mxu1 %v2284_v18 }
 0x1d2   :  { %2179 = vmatprep.subr.bf16.mxu0 %v2286_v21  ;;  %v834_v34 = vpop.permute.xlu0 %833 }
 0x1d3   :  { %v841_v27 = vpop.permute.xlu1 %840  ;;  %v910_v29 = vld [vmem:[#allocation3 + $0x20] sm:$0xff]  ;;  %836 = vst.msk [vmem:[#allocation3 + $0x30] sm:$0xf] %vm564_vm6, %v834_v34 }
 0x1d4   :  { %843 = vst.msk [vmem:[#allocation3 + $0x30] sm:$0xf0] %vm572_vm7, %v841_v27  ;;  %1565 = vmatmul.mubr.bf16.vlgmr.msra.gmra.mrb[8].mxu1 %v910_v29 }
 0x1d5   :  { %2180 = vmatpush3.bf16.msra.mxu0 %v2287_v25 }
 0x1d6   :  { %2181 = vmatprep.subr.bf16.mxu0 %v2288_v26  ;;  %v806_v30 = vpop.permute.xlu0 %805 }
 0x1d7   :  { %v813_v57 = vpop.permute.xlu1 %812  ;;  %v913_v31 = vld [vmem:[#allocation3 + $0x38] sm:$0xff]  ;;  %808 = vst.msk [vmem:[#allocation3 + $0x68] sm:$0xf] %vm564_vm6, %v806_v30 }
 0x1d8   :  { %815 = vst.msk [vmem:[#allocation3 + $0x68] sm:$0xf0] %vm572_vm7, %v813_v57  ;;  %1613 = vmatprep.mubr.bf16.mxu0 %v913_v31 }
 0x1d9   :  { %2182 = vmatpush3.bf16.msra.mxu0 %v2289_v32 }
 0x1da   :  { %v758_v35 = vpop.permute.xlu0 %757 }
 0x1db   :  { %v765_v33 = vpop.permute.xlu1 %764  ;;  %v912_v37 = vld [vmem:[#allocation3 + $0x30] sm:$0xff]  ;;  %760 = vst.msk [vmem:[#allocation3 + $0x60] sm:$0xf] %vm564_vm6, %v758_v35 }
 0x1dc   :  { %767 = vst.msk [vmem:[#allocation3 + $0x60] sm:$0xf0] %vm572_vm7, %v765_v33  ;;  %1614 = vmatmul.mubr.bf16.vlgmr.msra.gmra.mrb[24].mxu0 %v912_v37 }
 0x1de   :  { %v896_v38 = vpop.permute.xlu0 %895 }
 0x1df   :  { %v919_v39 = vld [vmem:[#allocation3 + $0x68] sm:$0xff]  ;;  %v855_v40 = vpop.permute.xlu1 %854  ;;  %898 = vst.msk [vmem:[#allocation3 + $0x78] sm:$0xf] %vm564_vm6, %v896_v38 }
 0x1e0   :  { %1572 = vmatprep.mubr.bf16.mxu1 %v919_v39  ;;  %857 = vst.msk [vmem:[#allocation3 + $0x70] sm:$0xf0] %vm572_vm7, %v855_v40 }
 0x1e2   :  { %v848_v42 = vpop.permute.xlu0 %847 }
 0x1e3   :  { %v918_v43 = vld [vmem:[#allocation3 + $0x60] sm:$0xff]  ;;  %850 = vst.msk [vmem:[#allocation3 + $0x70] sm:$0xf] %vm564_vm6, %v848_v42 }
 0x1e4   :  { %1573 = vmatmul.mubr.bf16.gmra.mrb[12].mxu1 %v918_v43 }
 0x1e6   :  { %v921_v45 = vld [vmem:[#allocation3 + $0x78] sm:$0xff] }
 0x1e7   :  { %1621 = vmatprep.mubr.bf16.mxu0 %v921_v45 }
 0x1ea   :  { %v920_v46 = vld [vmem:[#allocation3 + $0x70] sm:$0xff] }
 0x1eb   :  { %1622 = vmatmul.mubr.bf16.gmra.mrb[28].mxu0 %v920_v46 }
 0x287   :  { %v2099_v48 = vpop.f32.mrb[0].mxu1 }
 0x288   :  { %v2100_v49 = vpop.f32.mrb[1].mxu1 }
 0x289   :  { %v2101_v51 = vadd.f32 %v2100_v49, %v2099_v48  ;;  %v2102_v52 = vpop.f32.mrb[2].mxu1 }
 0x28a   :  { %v2103_v53 = vpop.f32.mrb[3].mxu1 }
 0x28b   :  { %v2104_v54 = vadd.f32 %v2103_v53, %v2102_v52 }
 0x28f   :  { %v2127_v55 = vpop.f32.mrb[16].mxu0 }
 0x290   :  { %v2128_v56 = vpop.f32.mrb[17].mxu0 }
 0x291   :  { %v2129_v59 = vadd.f32 %v2128_v56, %v2127_v55  ;;  %v2130_v61 = vpop.f32.mrb[18].mxu0  ;;  %v2302_v56 = vmov 1966171168  }
 0x292   :  { %v2131_v62 = vpop.f32.mrb[19].mxu0 }
 0x293   :  { %v1518_v63 = vadd.f32 %v2129_v59, %v2101_v51  ;;  %v2132_v0 = vadd.f32 %v2131_v62, %v2130_v61  ;;  %v1708_v59 = vunpack.c.l.s4 %v2302_v56 }
 0x295   :  { %v1521_v2 = vadd.f32 %v2132_v0, %v2104_v54 }
 0x297   :  { %v2105_v3 = vpop.f32.mrb[4].mxu1 }
 0x298   :  { %v2106_v4 = vpop.f32.mrb[5].mxu1 }
 0x299   :  { %v2107_v60 = vadd.f32 %v2106_v4, %v2105_v3  ;;  %v2108_v20 = vpop.f32.mrb[6].mxu1 }
 0x29a   :  { %v2109_v17 = vpop.f32.mrb[7].mxu1 }
 0x29b   :  { %v2110_v6 = vadd.f32 %v2109_v17, %v2108_v20 }
 0x29f   :  { %v2133_v58 = vpop.f32.mrb[20].mxu0 }
 0x2a0   :  { %v2134_v19 = vpop.f32.mrb[21].mxu0 }
 0x2a1   :  { %v2135_v28 = vadd.f32 %v2134_v19, %v2133_v58  ;;  %v2136_v16 = vpop.f32.mrb[22].mxu0 }
 0x2a2   :  { %v2137_v7 = vpop.f32.mrb[23].mxu0 }
 0x2a3   :  { %v1526_v8 = vadd.f32 %v2135_v28, %v2107_v60  ;;  %v2138_v44 = vadd.f32 %v2137_v7, %v2136_v16  ;;  %v1700_v60 = vld [vmem:[%s3027_s7] sm:$0xff] }
 0x2a5   :  { %v1529_v9 = vadd.f32 %v2138_v44, %v2110_v6  ;;  %v1706_v6 = vcombine.high %v1700_v60, %v1700_v60 }
 0x2a7   :  { %v2155_v36 = vpop.f32.mrb[8].mxu1 }
 0x2a8   :  { %v2156_v10 = vpop.f32.mrb[9].mxu1 }
 0x2a9   :  { %v2157_v23 = vadd.f32 %v2156_v10, %v2155_v36  ;;  %v2158_v11 = vpop.f32.mrb[10].mxu1  ;;  %v1701_v36 = vld [vmem:[%s3027_s7 + $0x8] sm:$0xff] }
 0x2aa   :  { %v2159_v41 = vpop.f32.mrb[11].mxu1 }
 0x2ab   :  { %v1567_v12 = vadd.f32 %v2157_v23, %v1518_v63  ;;  %v2160_v13 = vadd.f32 %v2159_v41, %v2158_v11 }
 0x2ad   :  { %v1570_v14 = vadd.f32 %v2160_v13, %v1521_v2  ;;  %v1709_v2 = vunpack.c.0.s8 %v1708_v59 }
 0x2af   :  { %v2183_v1 = vpop.f32.mrb[24].mxu0  ;;  %v1712_v58 = vsub.s32 %v1709_v2, %v2581_v47 }
 0x2b0   :  { %v2184_v15 = vpop.f32.mrb[25].mxu0 }
 0x2b1   :  { %v2185_v18 = vadd.f32 %v2184_v15, %v2183_v1  ;;  %v2186_v21 = vpop.f32.mrb[26].mxu0  ;;  %v1713_v11 = vrot.slane %v1700_v60, %v1712_v58  ;;  %v1762_v41 = vrot.slane %v1701_v36, %v1712_v58 }
 0x2b2   :  { %v2187_v5 = vpop.f32.mrb[27].mxu0 }
 0x2b3   :  { %v2929_v22 = vadd.f32 %v2185_v18, %v1567_v12  ;;  %v2188_v24 = vadd.f32 %v2187_v5, %v2186_v21  ;;  %v1721_v15 = vcombine.high %v1713_v11, %v1713_v11  ;;  %v1770_v18 = vcombine.high %v1762_v41, %v1762_v41 }
 0x2b5   :  { %v2931_v25 = vadd.f32 %v2188_v24, %v1570_v14  ;;  %v1639_v26 = vmul.f32 %v2929_v22, %v2929_v22  ;;  %v1755_v14 = vcombine.high %v1701_v36, %v1701_v36 }
 0x2b7   :  { %v1630_v27 = vadd.f32 %v2931_v25, %v2929_v22  ;;  %v1640_v34 = vmul.f32 %v2931_v25, %v2931_v25  ;;  %v2161_v29 = vpop.f32.mrb[12].mxu1 }
 0x2b8   :  { %v2162_v32 = vpop.f32.mrb[13].mxu1 }
 0x2b9   :  { %v1643_v57 = vadd.f32 %v1640_v34, %v1639_v26  ;;  %v2163_v30 = vadd.f32 %v2162_v32, %v2161_v29  ;;  %v2164_v31 = vpop.f32.mrb[14].mxu1  ;;  %v1769_v26 = vrot.slane %v1755_v14, %v1712_v58  ;;  %v1729_v29 = vrot.slane %v1713_v11, %v1712_v58 }
 0x2ba   :  { %v2165_v33 = vpop.f32.mrb[15].mxu1  ;;  %v1743_v32 = vrot.slane %v1721_v15, %v1712_v58 }
 0x2bb   :  { %v1575_v35 = vadd.f32 %v2163_v30, %v1526_v8  ;;  %v2166_v37 = vadd.f32 %v2165_v33, %v2164_v31  ;;  %v1720_v8 = vrot.slane %v1706_v6, %v1712_v58  ;;  %v1792_v30 = vrot.slane %v1770_v18, %v1712_v58  ;;  %v2073_v18 = vld [vmem:[%s3030_s8] ss:$0 sm:$0xff] }
 0x2bd   :  { %v1578_v38 = vadd.f32 %v2166_v37, %v1529_v9  ;;  %v1722_v12 = vcombine.high %v1720_v8, %v1720_v8  ;;  %v1736_v21 = vrot.slane %v1720_v8, %v1712_v58  ;;  %v1843_v2 = vrot.slane %v1792_v30, %v2584_v50 }
 0x2be   :  { %v2189_v39 = vpop.f32.mrb[28].mxu0 }
 0x2bf   :  { %v2190_v40 = vpop.f32.mrb[29].mxu0  ;;  %v1750_v5 = vrot.slane %v1722_v12, %v1712_v58  ;;  %v1752_v31 = vcombine.high %v1736_v21, %v1736_v21  ;;  %v1823_v37 = vrot.slane %v1736_v21, %v2584_v50  ;;  %v1703_v21 = vld [vmem:[%s3031_s9] sm:$0x3] }
 0x2c0   :  { %v2191_v42 = vadd.f32 %v2190_v40, %v2189_v39  ;;  %v2192_v43 = vpop.f32.mrb[30].mxu0  ;;  %v1751_v40 = vcombine.high %v1729_v29, %v1729_v29 }
 0x2c1   :  { %v2193_v45 = vpop.f32.mrb[31].mxu0  ;;  %v1754_v33 = vcombine.high %v1750_v5, %v1750_v5 }
 0x2c2   :  { %v2939_v46 = vadd.f32 %v2191_v42, %v1575_v35  ;;  %v2194_v48 = vadd.f32 %v2193_v45, %v2192_v43  ;;  %v1771_v35 = vcombine.high %v1769_v26, %v1769_v26  ;;  %v1753_v42 = vcombine.high %v1743_v32, %v1743_v32 }
 0x2c3   :  { %v1802_v45 = vcombine.high %v1792_v30, %v1792_v30 }
 0x2c4   :  { %v1631_v49 = vadd.f32 %v1630_v27, %v2939_v46  ;;  %v1641_v51 = vmul.f32 %v2939_v46, %v2939_v46  ;;  %v2944_v52 = vadd.f32 %v2194_v48, %v1578_v38  ;;  %v2303_v27 = vmov 1983009808  }
 0x2c5   :  { %v1871_v34 = vunpack.c.l.s4 %v2303_v27  ;;  %v1827_v38 = vrot.slane %v1750_v5, %v2584_v50  ;;  %v1831_v48 = vrot.slane %v1752_v31, %v2584_v50 }
 0x2c6   :  { %v1644_v53 = vadd.f32 %v1643_v57, %v1641_v51  ;;  %v1632_v54 = vadd.f32 %v1631_v49, %v2944_v52  ;;  %v1642_v55 = vmul.f32 %v2944_v52, %v2944_v52  ;;  %v1778_v57 = vrot.slane %v1762_v41, %v1712_v58 }
 0x2c7   :  { %v1872_v39 = vunpack.c.0.s8 %v1871_v34  ;;  %v1835_v49 = vrot.slane %v1754_v33, %v2584_v50  ;;  %v1807_v51 = vrot.slane %v1729_v29, %v2584_v50  ;;  %v1885_v59 = vcombine.low %v1823_v37, %v1827_v38 }
 0x2c8   :  { %v1633_v61 = vrot.slane %v1632_v54, 4  ;;  %v1645_v62 = vadd.f32 %v1644_v53, %v1642_v55  ;;  %v1800_v43 = vcombine.high %v1778_v57, %v1778_v57  ;;  %v1811_v53 = vrot.slane %v1743_v32, %v2584_v50 }
 0x2c9   :  { %v1799_v55 = vrot.slane %v1771_v35, %v1712_v58  ;;  %v2967_v56 = vsub.s32 %v1872_v39, %v2581_v47  ;;  %v1886_v60 = vcombine.low %v1831_v48, %v1835_v49  ;;  %v1969_v34 = vmul.f32 %v2073_v18, %v1703_v21 }
 0x2ca   :  { %v1634_v63 = vadd.f32 %v1633_v61, %v1632_v54  ;;  %v1646_v0 = vrot.slane %v1645_v62, 4  ;;  %v1785_v54 = vrot.slane %v1769_v26, %v1712_v58  ;;  %v1815_v61 = vrot.slane %v1751_v40, %v2584_v50 }
 0x2cb   :  { %v1868_v47 = vcombine.low %v1807_v51, %v1811_v53  ;;  %v1803_v6 = vcombine.high %v1799_v55, %v1799_v55  ;;  %v1859_v41 = vrot.slane %v1799_v55, %v2584_v50  ;;  %v1971_v53 = vsel %vm1970_vm4, %v1969_v34, 0.0 }
 0x2cc   :  { %v1635_v3 = vrot.slane %v1634_v63, 2  ;;  %v1647_v4 = vadd.f32 %v1646_v0, %v1645_v62  ;;  %v1839_v62 = vrot.slane %v1778_v57, %v2584_v50  ;;  %v1819_v0 = vrot.slane %v1753_v42, %v2584_v50 }
 0x2cd   :  { %v1855_v11 = vrot.slane %v1785_v54, %v2584_v50 }
 0x2ce   :  { %v1636_v20 = vadd.f32 %v1635_v3, %v1634_v63  ;;  %v1648_v17 = vrot.slane %v1647_v4, 2  ;;  %v1652_v63 = vld [vmem:[%s3028_s5] sm:$0x1]  ;;  %v1847_v3 = vrot.slane %v1800_v43, %v2584_v50 }
 0x2cf   :  { %v1919_v27 = vcombine.low %v1855_v11, %v1859_v41 }
 0x2d0   :  { %v1637_v19 = vrot.slane %v1636_v20, 1  ;;  %v1649_v28 = vadd.f32 %v1648_v17, %v1647_v4  ;;  %v1851_v4 = vrot.slane %v1802_v45, %v2584_v50  ;;  %v1801_v17 = vcombine.high %v1785_v54, %v1785_v54 }
 0x2d1   :  { %v1927_v42 = vrot.slane %v1919_v27, %v2967_v56 }
 0x2d2   :  { %v1638_v16 = vadd.f32 %v1637_v19, %v1636_v20  ;;  %v1650_v7 = vrot.slane %v1649_v28, 1  ;;  %v1653_v19 = vld [vmem:[%s3029_s6] sm:$0x1]  ;;  %v1903_v8 = vcombine.low %v1847_v3, %v1851_v4  ;;  %v1863_v12 = vrot.slane %v1801_v17, %v2584_v50 }
 0x2d4   :  { %v1651_v44 = vadd.f32 %v1650_v7, %v1649_v28  ;;  %v2953_v9 = vmul.f32 0.03125, %v1638_v16  ;;  %v1893_v28 = vrot.slane %v1885_v59, %v2967_v56  ;;  %v1869_v16 = vcombine.low %v1815_v61, %v1819_v0 }
 0x2d5   :  { %v1902_v7 = vcombine.low %v1839_v62, %v1843_v2 }
 0x2d6   :  { %v1655_v10 = vmul.f32 0.03125, %v1651_v44  ;;  %v1656_v23 = vmul.f32 %v2953_v9, %v2953_v9  ;;  %v1883_v5 = vrot.slane %v1869_v16, %v2967_v56 }
 0x2d7   :  { %v1910_v26 = vrot.slane %v1902_v7, %v2967_v56 }
 0x2d8   :  { %v1657_v13 = vsub.f32 %v1655_v10, %v1656_v23  ;;  %v1900_v10 = vrot.slane %v1886_v60, %v2967_v56  ;;  %v1876_v23 = vrot.slane %v1868_v47, %v2967_v56 }
 0x2da   :  { %v1658_v1 = vmax.f32 %v1657_v13, 0.0  ;;  %v1867_v13 = vrot.slane %v1803_v6, %v2584_v50  ;;  %v1901_v31 = vcombine.low %v1893_v28, %v1900_v10  ;;  %v1884_v33 = vcombine.low %v1876_v23, %v1883_v5 }
 0x2dc   :  { %v1659_v24 = vadd.f32 1e-05, %v1658_v1 }
 0x2de   :  { %2294 = vrsqrt.f32 %v1659_v24 }
 0x2e8   :  { %v2295_v20 = vpop.eup %2294 }
 0x2e9   :  { %v1661_v58 = vmul.f32 %v2295_v20, %v1652_v63 }
 0x2eb   :  { %v1662_v44 = vmul.f32 %v1661_v58, %v2953_v9  ;;  %v1668_v36 = vrot.slane %v1661_v58, %v2584_v50 }
 0x2ed   :  { %v1673_v14 = vmul.f32 %v1668_v36, %v2944_v52  ;;  %v1663_v1 = vsub.f32 %v1653_v19, %v1662_v44  ;;  %v1671_v15 = vmul.f32 %v1668_v36, %v2931_v25  ;;  %v1670_v9 = vmul.f32 %v1668_v36, %v2929_v22 }
 0x2ee   :  { %v1672_v24 = vmul.f32 %v1668_v36, %v2939_v46  ;;  %v1917_v52 = vrot.slane %v1903_v8, %v2967_v56  ;;  %v1920_v22 = vcombine.low %v1863_v12, %v1867_v13 }
 0x2ef   :  { %v1678_v25 = vrot.slane %v1663_v1, %v2584_v50 }
 0x2f0   :  { %v1918_v35 = vcombine.low %v1910_v26, %v1917_v52  ;;  %v1934_v43 = vrot.slane %v1920_v22, %v2967_v56 }
 0x2f1   :  { %v1681_v29 = vadd.f32 %v1678_v25, %v1671_v15  ;;  %v1680_v32 = vadd.f32 %v1678_v25, %v1670_v9  ;;  %v1682_v57 = vadd.f32 %v1678_v25, %v1672_v24  ;;  %v1683_v30 = vadd.f32 %v1678_v25, %v1673_v14 }
 0x2f2   :  { %v1935_v55 = vcombine.low %v1927_v42, %v1934_v43 }
 0x2f3   :  { %vm1685_vm5 = vcmp.ge.f32.partialorder %v1681_v29, 0.0  ;;  %v1689_v37 = vmul.f32 0.2, %v1681_v29  ;;  %vm1684_vm6 = vcmp.ge.f32.partialorder %v1680_v32, 0.0  ;;  %v1688_v46 = vmul.f32 0.2, %v1680_v32 }
 0x2f4   :  { %vm1686_vm7 = vcmp.ge.f32.partialorder %v1682_v57, 0.0  ;;  %v1690_v38 = vmul.f32 0.2, %v1682_v57  ;;  %vm1687_vm8 = vcmp.ge.f32.partialorder %v1683_v30, 0.0  ;;  %v1691_v39 = vmul.f32 0.2, %v1683_v30 }
 0x2f5   :  { %v1693_v50 = vsel %vm1685_vm5, %v1681_v29, %v1689_v37  ;;  %v1692_v40 = vsel %vm1684_vm6, %v1680_v32, %v1688_v46 }
 0x2f6   :  { %v1941_v45 = vmul.f32 %v1901_v31, %v1693_v50  ;;  %1697 = vst [vmem:[%s3032_s10 + $0x8] sm:$0xff] %v1693_v50  ;;  %v1940_v48 = vmul.f32 %v1884_v33, %v1692_v40  ;;  %1696 = vst [vmem:[%s3032_s10] sm:$0xff] %v1692_v40  ;;  %v1694_v49 = vsel %vm1686_vm7, %v1682_v57, %v1690_v38 }
 0x2f7   :  { %v1695_v51 = vsel %vm1687_vm8, %v1683_v30, %v1691_v39  ;;  %1698 = vst [vmem:[%s3032_s10 + $0x10] sm:$0xff] %v1694_v49  ;;  %v1942_v54 = vmul.f32 %v1918_v35, %v1694_v49 }
 0x2f8   :  { %1699 = vst [vmem:[%s3032_s10 + $0x18] sm:$0xff] %v1695_v51  ;;  %1946 = vadd.xlane.f32.xlu1 %v1941_v45  ;;  %1944 = vadd.xlane.f32.xlu0 %v1940_v48  ;;  %v1943_v56 = vmul.f32 %v1935_v55, %v1695_v51 }
 0x2fc   :  { %1948 = vadd.xlane.f32.xlu0 %v1942_v54  ;;  %1972 = vadd.xlane.f32.xlu1 %v1971_v53 }
 0x300   :  { %1950 = vadd.xlane.f32.xlu0 %v1943_v56 }
 0x385   :  { %v1945_v59 = vpop.xlane.xlu0 %1944  ;;  %v1947_v62 = vpop.xlane.xlu1 %1946 }
 0x389   :  { %v1949_v61 = vpop.xlane.xlu0 %1948  ;;  %v1973_v20 = vpop.xlane.xlu1 %1972 }
 0x38a   :  { %v1952_v0 = vadd.f32 %v1949_v61, %v1945_v59 }
 0x38d   :  { %v1951_v63 = vpop.xlane.xlu0 %1950 }
 0x38e   :  { %v1953_v2 = vadd.f32 %v1951_v63, %v1947_v62 }
 0x390   :  { %v1954_v3 = vadd.f32 %v1953_v2, %v1952_v0 }
 0x392   :  { %v1956_v4 = vrot.slane %v1954_v3, 4 }
 0x394   :  { %v1958_v60 = vadd.f32 %v1956_v4, %v1954_v3 }
 0x396   :  { %v1960_v47 = vrot.slane %v1958_v60, 2 }
 0x398   :  { %v1962_v17 = vadd.f32 %v1960_v47, %v1958_v60 }
 0x39a   :  { %v1974_v6 = vadd.f32 %v1973_v20, %v1962_v17 }
 0x39c   :  { %v1975_v58 = vsub.f32 0.0, %v1974_v6 }
 0x39e   :  { %v1976_v19 = vmul.f32 1.442695, %v1975_v58 }
 0x3a0   :  { %2296 = vpow2.f32 %v1976_v19 }
 0x3aa   :  { %v2297_v28 = vpop.eup %2296 }
 0x3ab   :  { %v1978_v16 = vadd.f32 1.0, %v2297_v28 }
 0x3ad   :  { %2298 = vrcp.f32 %v1978_v16 }
 0x3b7   :  { %v2299_v7 = vpop.eup %2298 }
 0x3b8   :  { %v1980_v8 = vmax.f32 %v2299_v7, 0.0 }
 0x3ba   :  { %v1981_v44 = vmin.f32 %v1980_v8, 1.0 }
 0x3bc   :  { %1983 = vst.msk [vmem:[%s3033_s11] sm:$0x3] %vm1982_vm14, %v1981_v44 }

</bundles_post_ra>
